<compile_context>
chip_gen: v5e
topology: v5e:2x2
jax: 0.10.0
libtpu: 0.0.40
codegen_flags: <defaults>
</compile_context>

<pallas_src>
import functools
import math

import jax
import jax.numpy as jnp
from jax.experimental import pallas as pl
from jax.experimental.pallas import tpu as pltpu

EPS = 1e-5


def _weird_layernorm_ref(t):
    # Exactly the reference LayerNormalization.forward (alpha unused, bias = 0).
    d = t.shape[-1]
    mean = jnp.mean(t, axis=-1, keepdims=True)
    var = jnp.sum((t - mean) ** 2, axis=-1, keepdims=True) / (d - 1)  # torch unbiased std
    std = jnp.sqrt(var)
    return EPS * (t - mean) / (std + EPS)


def _weird_layernorm(t):
    # Kernel-side version: divide via the EUP reciprocal (approx err ~2^-12, negligible).
    d = t.shape[-1]
    mean = jnp.mean(t, axis=-1, keepdims=True)
    var = jnp.sum((t - mean) ** 2, axis=-1, keepdims=True) / (d - 1)
    std = jnp.sqrt(var)
    return (EPS * (t - mean)) * pl.reciprocal(std + EPS, approx=True)


def fused_encoder_kernel(x_ref, wqkv_ref, wo_ref, w1_ref, w2_ref, o_ref, *,
                         num_layers, num_heads):
    """One grid step = one batch element through the whole Encoder (all layers)."""
    S, D = x_ref.shape[1], x_ref.shape[2]
    H = num_heads
    d_k = D // H
    scale = 1.0 / math.sqrt(d_k)

    x = x_ref[0]                                   # (S, D) f32 residual stream

    for layer in range(num_layers):                # static; weights fully VMEM-resident
        wqkv = wqkv_ref[layer]                     # (D, 3D)  bf16, lane-dense
        wo = wo_ref[layer]                         # (D, D)   bf16
        w1 = w1_ref[layer]                         # (D, dff) bf16
        w2 = w2_ref[layer]                         # (dff, D) bf16

        # ---- residual 0: x + MHA(LN(x))  (mask ignored, dropout identity — ref quirks)
        n1 = _weird_layernorm(x).astype(jnp.bfloat16)
        qkv = jnp.dot(n1, wqkv, preferred_element_type=jnp.float32)     # (S, 3D) f32
        # one reshape + one swapaxes for ALL heads: (S, 3D) -> (3H, S, d_k)
        qkv_h = jnp.swapaxes(qkv.reshape(S, 3 * H, d_k), 0, 1)
        qh = qkv_h[:H]                            # (H, S, d_k)
        kh = qkv_h[H:2 * H]
        vh = qkv_h[2 * H:]
        s = jnp.einsum("hqd,hkd->hqk", qh, kh,
                       preferred_element_type=jnp.float32) * scale      # (H, S, S)
        s = s - jnp.max(s, axis=-1, keepdims=True)
        p = jnp.exp(s)
        p = p * pl.reciprocal(jnp.sum(p, axis=-1, keepdims=True), approx=True)
        oh = jnp.einsum("hqk,hkd->hqd", p, vh,
                        preferred_element_type=jnp.float32)             # (H, S, d_k)
        attn = jnp.swapaxes(oh, 0, 1).reshape(S, D)                     # concat heads
        x = x + jnp.dot(attn.astype(jnp.bfloat16), wo,
                        preferred_element_type=jnp.float32)

        # ---- residual 1: x + FFN(LN(x))
        n2 = _weird_layernorm(x).astype(jnp.bfloat16)
        h1 = jnp.maximum(jnp.dot(n2, w1, preferred_element_type=jnp.float32), 0.0)
        x = x + jnp.dot(h1.astype(jnp.bfloat16), w2,
                        preferred_element_type=jnp.float32)

    # Final Encoder-level LayerNormalization, written every (disjoint) grid step.
    o_ref[...] = _weird_layernorm(x).reshape(1, S, D).astype(o_ref.dtype)


def encoder_forward(x, layer_params, num_heads, mask=None):
    """x: (B, S, D). layer_params: list of (wq_t, wk_t, wv_t, wo_t, w1_t, w2_t) with
    each w*_t already transposed to (in, out).  `mask` is accepted for API fidelity but
    has no effect (the reference discards the masked_fill result)."""
    del mask
    B, S, D = x.shape
    L = len(layer_params)
    H = num_heads
    d_k = D // H
    d_ff = layer_params[0][4].shape[1]

    # Lane-dense, layer-stacked weight tensors; bf16 MXU operands (f32 accumulation).
    wqkv = jnp.stack(
        [jnp.concatenate([p[0], p[1], p[2]], axis=1) for p in layer_params]
    ).astype(jnp.bfloat16)                                                # (L, D, 3D)
    wo = jnp.stack([p[3] for p in layer_params]).astype(jnp.bfloat16)     # (L, D, D)
    w1 = jnp.stack([p[4] for p in layer_params]).astype(jnp.bfloat16)     # (L, D, dff)
    w2 = jnp.stack([p[5] for p in layer_params]).astype(jnp.bfloat16)     # (L, dff, D)

    flops = B * L * (2 * S * D * 3 * D            # fused QKV projection
                     + 2 * 2 * H * S * S * d_k    # scores + p@v
                     + 2 * S * D * D              # Wo
                     + 2 * 2 * S * D * d_ff)      # FFN
    transcendentals = B * L * H * S * S
    bytes_accessed = (4 * 2 * B * S * D
                      + 2 * L * (3 * D * D + D * D + 2 * D * d_ff))

    kernel = functools.partial(fused_encoder_kernel, num_layers=L, num_heads=H)

    return pl.pallas_call(
        kernel,
        out_shape=jax.ShapeDtypeStruct((B, S, D), x.dtype),
        grid=(B,),                                                    # parallel over batch
        in_specs=[
            pl.BlockSpec((1, S, D), lambda b: (b, 0, 0)),             # activation block
            pl.BlockSpec((L, D, 3 * D), lambda b: (0, 0, 0)),         # fused QKV (resident)
            pl.BlockSpec((L, D, D), lambda b: (0, 0, 0)),             # Wo
            pl.BlockSpec((L, D, d_ff), lambda b: (0, 0, 0)),          # FFN W1
            pl.BlockSpec((L, d_ff, D), lambda b: (0, 0, 0)),          # FFN W2
        ],
        out_specs=pl.BlockSpec((1, S, D), lambda b: (b, 0, 0)),
        compiler_params=pltpu.CompilerParams(
            dimension_semantics=("parallel",),                        # uses both TCs on v7x
            vmem_limit_bytes=32 * 1024 * 1024),
        cost_estimate=pl.CostEstimate(flops=flops,
                                      transcendentals=transcendentals,
                                      bytes_accessed=bytes_accessed),
    )(x, wqkv, wo, w1, w2)


# ------------------------- pure-JAX reference (f32, exact) -------------------------
def _ref_forward(x, layer_params, num_heads):
    B, S, D = x.shape
    d_k = D // num_heads
    for (wq_t, wk_t, wv_t, wo_t, w1_t, w2_t) in layer_params:
        n1 = _weird_layernorm_ref(x)
        q = n1 @ wq_t
        k = n1 @ wk_t
        v = n1 @ wv_t
        qh = q.reshape(B, S, num_heads, d_k).transpose(0, 2, 1, 3)
        kh = k.reshape(B, S, num_heads, d_k).transpose(0, 2, 1, 3)
        vh = v.reshape(B, S, num_heads, d_k).transpose(0, 2, 1, 3)
        sc = jnp.einsum("bhqd,bhkd->bhqk", qh, kh) / (d_k ** 0.5)
        p = jax.nn.softmax(sc, axis=-1)
        o = jnp.einsum("bhqk,bhkd->bhqd", p, vh).transpose(0, 2, 1, 3).reshape(B, S, D)
        x1 = x + o @ wo_t
        n2 = _weird_layernorm_ref(x1)
        x = x1 + jnp.maximum(n2 @ w1_t, 0.0) @ w2_t
    return _weird_layernorm_ref(x)


if __name__ == "__main__":
    B, S, D, H, D_FF, N_LAYERS = 2, 8, 32, 4, 64, 2
    key = jax.random.PRNGKey(0)
    key, kx = jax.random.split(key)
    x = jax.random.normal(kx, (B, S, D), dtype=jnp.float32)
    mask = jnp.ones((B, 1, S, S), dtype=jnp.float32)  # no effect (reference discards masked_fill)

    layer_params = []
    for _ in range(N_LAYERS):
        keys = jax.random.split(key, 7)
        key = keys[0]
        init = lambda k, fan_in, shape: (
            jax.random.uniform(k, shape, jnp.float32, -1.0, 1.0) / (fan_in ** 0.5))
        # torch Linear stores (out, in); we pass W.T, i.e. (in, out) directly.
        wq_t = init(keys[1], D, (D, D))
        wk_t = init(keys[2], D, (D, D))
        wv_t = init(keys[3], D, (D, D))
        wo_t = init(keys[4], D, (D, D))
        w1_t = init(keys[5], D, (D, D_FF))
        w2_t = init(keys[6], D_FF, (D_FF, D))
        layer_params.append((wq_t, wk_t, wv_t, wo_t, w1_t, w2_t))

    out = encoder_forward(x, layer_params, num_heads=H, mask=mask)
    out = jax.block_until_ready(out)

    ref = _ref_forward(x, layer_params, num_heads=H)
    assert out.shape == (B, S, D) and out.dtype == jnp.float32
    assert jnp.allclose(out, ref, rtol=1e-3, atol=1e-6), "mismatch vs JAX reference"
    print("KERNEL_OK")
</pallas_src>

<mosaic_0001>
module attributes {stable_mosaic.version = 11 : i64} {
  func.func @fused_encoder_kernel(%arg0: i32, %arg1: memref<1x8x32xf32, #tpu.memory_space<vmem>>, %arg2: memref<2x32x96xbf16, #tpu.memory_space<vmem>>, %arg3: memref<2x32x32xbf16, #tpu.memory_space<vmem>>, %arg4: memref<2x32x64xbf16, #tpu.memory_space<vmem>>, %arg5: memref<2x64x32xbf16, #tpu.memory_space<vmem>>, %arg6: memref<1x8x32xf32, #tpu.memory_space<vmem>>) attributes {dimension_semantics = [#tpu.dimension_semantics<parallel>], iteration_bounds = array<i64: 2>, scalar_prefetch = 0 : i64, scratch_operands = 0 : i64, tpu.core_type = #tpu.core_type<tc>, window_params = [{transform_indices = @transform_0, window_bounds = array<i64: 1, 8, 32>}, {pipeline_mode = #tpu.pipeline_mode<synchronous>, transform_indices = @transform_1, window_bounds = array<i64: 2, 32, 96>}, {pipeline_mode = #tpu.pipeline_mode<synchronous>, transform_indices = @transform_2, window_bounds = array<i64: 2, 32, 32>}, {pipeline_mode = #tpu.pipeline_mode<synchronous>, transform_indices = @transform_3, window_bounds = array<i64: 2, 32, 64>}, {pipeline_mode = #tpu.pipeline_mode<synchronous>, transform_indices = @transform_4, window_bounds = array<i64: 2, 64, 32>}, {transform_indices = @transform_5, window_bounds = array<i64: 1, 8, 32>}]} {
    %c0 = arith.constant 0 : index
    %c0_0 = arith.constant 0 : index
    %c0_1 = arith.constant 0 : index
    %0 = vector.load %arg1[%c0, %c0_0, %c0_1] : memref<1x8x32xf32, #tpu.memory_space<vmem>>, vector<1x8x32xf32>
    %1 = vector.shape_cast %0 : vector<1x8x32xf32> to vector<8x32xf32>
    %c0_2 = arith.constant 0 : index
    %c0_3 = arith.constant 0 : index
    %c0_4 = arith.constant 0 : index
    %2 = vector.load %arg2[%c0_2, %c0_3, %c0_4] : memref<2x32x96xbf16, #tpu.memory_space<vmem>>, vector<1x32x96xbf16>
    %3 = vector.shape_cast %2 : vector<1x32x96xbf16> to vector<32x96xbf16>
    %c0_5 = arith.constant 0 : index
    %c0_6 = arith.constant 0 : index
    %c0_7 = arith.constant 0 : index
    %4 = vector.load %arg3[%c0_5, %c0_6, %c0_7] : memref<2x32x32xbf16, #tpu.memory_space<vmem>>, vector<1x32x32xbf16>
    %5 = vector.shape_cast %4 : vector<1x32x32xbf16> to vector<32x32xbf16>
    %c0_8 = arith.constant 0 : index
    %c0_9 = arith.constant 0 : index
    %c0_10 = arith.constant 0 : index
    %6 = vector.load %arg4[%c0_8, %c0_9, %c0_10] : memref<2x32x64xbf16, #tpu.memory_space<vmem>>, vector<1x32x64xbf16>
    %7 = vector.shape_cast %6 : vector<1x32x64xbf16> to vector<32x64xbf16>
    %c0_11 = arith.constant 0 : index
    %c0_12 = arith.constant 0 : index
    %c0_13 = arith.constant 0 : index
    %8 = vector.load %arg5[%c0_11, %c0_12, %c0_13] : memref<2x64x32xbf16, #tpu.memory_space<vmem>>, vector<1x64x32xbf16>
    %9 = vector.shape_cast %8 : vector<1x64x32xbf16> to vector<64x32xbf16>
    %cst = arith.constant dense<0.000000e+00> : vector<8xf32>
    %10 = vector.multi_reduction <add>, %1, %cst [1] : vector<8x32xf32> to vector<8xf32>
    %11 = vector.shape_cast %10 : vector<8xf32> to vector<8x1xf32>
    %cst_14 = arith.constant 3.200000e+01 : f32
    %12 = vector.broadcast %cst_14 : f32 to vector<8x1xf32>
    %13 = arith.divf %11, %12 : vector<8x1xf32>
    %14 = vector.broadcast %13 : vector<8x1xf32> to vector<8x32xf32>
    %15 = arith.subf %1, %14 : vector<8x32xf32>
    %16 = arith.mulf %15, %15 : vector<8x32xf32>
    %cst_15 = arith.constant dense<0.000000e+00> : vector<8xf32>
    %17 = vector.multi_reduction <add>, %16, %cst_15 [1] : vector<8x32xf32> to vector<8xf32>
    %18 = vector.shape_cast %17 : vector<8xf32> to vector<8x1xf32>
    %cst_16 = arith.constant 3.100000e+01 : f32
    %19 = vector.broadcast %cst_16 : f32 to vector<8x1xf32>
    %20 = arith.divf %18, %19 : vector<8x1xf32>
    %21 = math.sqrt %20 : vector<8x1xf32>
    %22 = vector.broadcast %13 : vector<8x1xf32> to vector<8x32xf32>
    %23 = arith.subf %1, %22 : vector<8x32xf32>
    %cst_17 = arith.constant 9.99999974E-6 : f32
    %24 = vector.broadcast %cst_17 : f32 to vector<8x32xf32>
    %25 = arith.mulf %24, %23 : vector<8x32xf32>
    %cst_18 = arith.constant 9.99999974E-6 : f32
    %26 = vector.broadcast %cst_18 : f32 to vector<8x1xf32>
    %27 = arith.addf %21, %26 : vector<8x1xf32>
    %28 = tpu.reciprocal %27 {approx = true} : vector<8x1xf32> -> vector<8x1xf32>
    %29 = vector.broadcast %28 : vector<8x1xf32> to vector<8x32xf32>
    %30 = arith.mulf %25, %29 : vector<8x32xf32>
    %31 = arith.truncf %30 : vector<8x32xf32> to vector<8x32xbf16>
    %cst_19 = arith.constant dense<0.000000e+00> : vector<8x96xf32>
    %32 = tpu.matmul %31, %3, %cst_19 {dimension_numbers = #tpu.dot_dimension_numbers<[1], [0], [0], [1], [0, 0, 1, 1], [], []>} : vector<8x32xbf16>, vector<32x96xbf16>, vector<8x96xf32> -> vector<8x96xf32>
    %33 = vector.shape_cast %32 : vector<8x96xf32> to vector<8x12x8xf32>
    %34 = tpu.transpose %33, [1, 0, 2] : vector<8x12x8xf32> -> vector<12x8x8xf32>
    %35 = vector.extract_strided_slice %34 {offsets = [0, 0, 0], sizes = [4, 8, 8], strides = [1, 1, 1]} : vector<12x8x8xf32> to vector<4x8x8xf32>
    %36 = vector.extract_strided_slice %34 {offsets = [4, 0, 0], sizes = [4, 8, 8], strides = [1, 1, 1]} : vector<12x8x8xf32> to vector<4x8x8xf32>
    %37 = vector.extract_strided_slice %34 {offsets = [8, 0, 0], sizes = [4, 8, 8], strides = [1, 1, 1]} : vector<12x8x8xf32> to vector<4x8x8xf32>
    "tpu.trace_start"() <{level = 10 : i32, message = "hqd,hkd->hqk"}> : () -> ()
    %cst_20 = arith.constant dense<0.000000e+00> : vector<4x8x8xf32>
    %38 = tpu.matmul %35, %36, %cst_20 {dimension_numbers = #tpu.dot_dimension_numbers<[2], [2], [1], [1], [0, 0, 0, 1, 1, 1], [0], [0]>} : vector<4x8x8xf32>, vector<4x8x8xf32>, vector<4x8x8xf32> -> vector<4x8x8xf32>
    "tpu.trace_stop"() : () -> ()
    %cst_21 = arith.constant 0.353553385 : f32
    %39 = vector.broadcast %cst_21 : f32 to vector<4x8x8xf32>
    %40 = arith.mulf %38, %39 : vector<4x8x8xf32>
    %cst_22 = arith.constant dense<0xFF800000> : vector<4x8xf32>
    %41 = vector.multi_reduction <maximumf>, %40, %cst_22 [2] : vector<4x8x8xf32> to vector<4x8xf32>
    %42 = vector.shape_cast %41 : vector<4x8xf32> to vector<4x8x1xf32>
    %43 = vector.broadcast %42 : vector<4x8x1xf32> to vector<4x8x8xf32>
    %44 = arith.subf %40, %43 : vector<4x8x8xf32>
    %45 = math.exp %44 : vector<4x8x8xf32>
    %cst_23 = arith.constant dense<0.000000e+00> : vector<4x8xf32>
    %46 = vector.multi_reduction <add>, %45, %cst_23 [2] : vector<4x8x8xf32> to vector<4x8xf32>
    %47 = vector.shape_cast %46 : vector<4x8xf32> to vector<4x8x1xf32>
    %48 = tpu.reciprocal %47 {approx = true} : vector<4x8x1xf32> -> vector<4x8x1xf32>
    %49 = vector.broadcast %48 : vector<4x8x1xf32> to vector<4x8x8xf32>
    %50 = arith.mulf %45, %49 : vector<4x8x8xf32>
    "tpu.trace_start"() <{level = 10 : i32, message = "hqk,hkd->hqd"}> : () -> ()
    %cst_24 = arith.constant dense<0.000000e+00> : vector<4x8x8xf32>
    %51 = tpu.matmul %50, %37, %cst_24 {dimension_numbers = #tpu.dot_dimension_numbers<[2], [1], [1], [2], [0, 0, 0, 1, 1, 2], [0], [0]>} : vector<4x8x8xf32>, vector<4x8x8xf32>, vector<4x8x8xf32> -> vector<4x8x8xf32>
    "tpu.trace_stop"() : () -> ()
    %52 = tpu.transpose %51, [1, 0, 2] : vector<4x8x8xf32> -> vector<8x4x8xf32>
    %53 = vector.shape_cast %52 : vector<8x4x8xf32> to vector<8x32xf32>
    %54 = arith.truncf %53 : vector<8x32xf32> to vector<8x32xbf16>
    %cst_25 = arith.constant dense<0.000000e+00> : vector<8x32xf32>
    %55 = tpu.matmul %54, %5, %cst_25 {dimension_numbers = #tpu.dot_dimension_numbers<[1], [0], [0], [1], [0, 0, 1, 1], [], []>} : vector<8x32xbf16>, vector<32x32xbf16>, vector<8x32xf32> -> vector<8x32xf32>
    %56 = arith.addf %1, %55 : vector<8x32xf32>
    %cst_26 = arith.constant dense<0.000000e+00> : vector<8xf32>
    %57 = vector.multi_reduction <add>, %56, %cst_26 [1] : vector<8x32xf32> to vector<8xf32>
    %58 = vector.shape_cast %57 : vector<8xf32> to vector<8x1xf32>
    %cst_27 = arith.constant 3.200000e+01 : f32
    %59 = vector.broadcast %cst_27 : f32 to vector<8x1xf32>
    %60 = arith.divf %58, %59 : vector<8x1xf32>
    %61 = vector.broadcast %60 : vector<8x1xf32> to vector<8x32xf32>
    %62 = arith.subf %56, %61 : vector<8x32xf32>
    %63 = arith.mulf %62, %62 : vector<8x32xf32>
    %cst_28 = arith.constant dense<0.000000e+00> : vector<8xf32>
    %64 = vector.multi_reduction <add>, %63, %cst_28 [1] : vector<8x32xf32> to vector<8xf32>
    %65 = vector.shape_cast %64 : vector<8xf32> to vector<8x1xf32>
    %cst_29 = arith.constant 3.100000e+01 : f32
    %66 = vector.broadcast %cst_29 : f32 to vector<8x1xf32>
    %67 = arith.divf %65, %66 : vector<8x1xf32>
    %68 = math.sqrt %67 : vector<8x1xf32>
    %69 = vector.broadcast %60 : vector<8x1xf32> to vector<8x32xf32>
    %70 = arith.subf %56, %69 : vector<8x32xf32>
    %cst_30 = arith.constant 9.99999974E-6 : f32
    %71 = vector.broadcast %cst_30 : f32 to vector<8x32xf32>
    %72 = arith.mulf %71, %70 : vector<8x32xf32>
    %cst_31 = arith.constant 9.99999974E-6 : f32
    %73 = vector.broadcast %cst_31 : f32 to vector<8x1xf32>
    %74 = arith.addf %68, %73 : vector<8x1xf32>
    %75 = tpu.reciprocal %74 {approx = true} : vector<8x1xf32> -> vector<8x1xf32>
    %76 = vector.broadcast %75 : vector<8x1xf32> to vector<8x32xf32>
    %77 = arith.mulf %72, %76 : vector<8x32xf32>
    %78 = arith.truncf %77 : vector<8x32xf32> to vector<8x32xbf16>
    %cst_32 = arith.constant dense<0.000000e+00> : vector<8x64xf32>
    %79 = tpu.matmul %78, %7, %cst_32 {dimension_numbers = #tpu.dot_dimension_numbers<[1], [0], [0], [1], [0, 0, 1, 1], [], []>} : vector<8x32xbf16>, vector<32x64xbf16>, vector<8x64xf32> -> vector<8x64xf32>
    %cst_33 = arith.constant 0.000000e+00 : f32
    %80 = vector.broadcast %cst_33 : f32 to vector<8x64xf32>
    %81 = arith.maximumf %79, %80 : vector<8x64xf32>
    %82 = arith.truncf %81 : vector<8x64xf32> to vector<8x64xbf16>
    %cst_34 = arith.constant dense<0.000000e+00> : vector<8x32xf32>
    %83 = tpu.matmul %82, %9, %cst_34 {dimension_numbers = #tpu.dot_dimension_numbers<[1], [0], [0], [1], [0, 0, 1, 1], [], []>} : vector<8x64xbf16>, vector<64x32xbf16>, vector<8x32xf32> -> vector<8x32xf32>
    %84 = arith.addf %56, %83 : vector<8x32xf32>
    %c1 = arith.constant 1 : index
    %c0_35 = arith.constant 0 : index
    %c0_36 = arith.constant 0 : index
    %85 = vector.load %arg2[%c1, %c0_35, %c0_36] : memref<2x32x96xbf16, #tpu.memory_space<vmem>>, vector<1x32x96xbf16>
    %86 = vector.shape_cast %85 : vector<1x32x96xbf16> to vector<32x96xbf16>
    %c1_37 = arith.constant 1 : index
    %c0_38 = arith.constant 0 : index
    %c0_39 = arith.constant 0 : index
    %87 = vector.load %arg3[%c1_37, %c0_38, %c0_39] : memref<2x32x32xbf16, #tpu.memory_space<vmem>>, vector<1x32x32xbf16>
    %88 = vector.shape_cast %87 : vector<1x32x32xbf16> to vector<32x32xbf16>
    %c1_40 = arith.constant 1 : index
    %c0_41 = arith.constant 0 : index
    %c0_42 = arith.constant 0 : index
    %89 = vector.load %arg4[%c1_40, %c0_41, %c0_42] : memref<2x32x64xbf16, #tpu.memory_space<vmem>>, vector<1x32x64xbf16>
    %90 = vector.shape_cast %89 : vector<1x32x64xbf16> to vector<32x64xbf16>
    %c1_43 = arith.constant 1 : index
    %c0_44 = arith.constant 0 : index
    %c0_45 = arith.constant 0 : index
    %91 = vector.load %arg5[%c1_43, %c0_44, %c0_45] : memref<2x64x32xbf16, #tpu.memory_space<vmem>>, vector<1x64x32xbf16>
    %92 = vector.shape_cast %91 : vector<1x64x32xbf16> to vector<64x32xbf16>
    %cst_46 = arith.constant dense<0.000000e+00> : vector<8xf32>
    %93 = vector.multi_reduction <add>, %84, %cst_46 [1] : vector<8x32xf32> to vector<8xf32>
    %94 = vector.shape_cast %93 : vector<8xf32> to vector<8x1xf32>
    %cst_47 = arith.constant 3.200000e+01 : f32
    %95 = vector.broadcast %cst_47 : f32 to vector<8x1xf32>
    %96 = arith.divf %94, %95 : vector<8x1xf32>
    %97 = vector.broadcast %96 : vector<8x1xf32> to vector<8x32xf32>
    %98 = arith.subf %84, %97 : vector<8x32xf32>
    %99 = arith.mulf %98, %98 : vector<8x32xf32>
    %cst_48 = arith.constant dense<0.000000e+00> : vector<8xf32>
    %100 = vector.multi_reduction <add>, %99, %cst_48 [1] : vector<8x32xf32> to vector<8xf32>
    %101 = vector.shape_cast %100 : vector<8xf32> to vector<8x1xf32>
    %cst_49 = arith.constant 3.100000e+01 : f32
    %102 = vector.broadcast %cst_49 : f32 to vector<8x1xf32>
    %103 = arith.divf %101, %102 : vector<8x1xf32>
    %104 = math.sqrt %103 : vector<8x1xf32>
    %105 = vector.broadcast %96 : vector<8x1xf32> to vector<8x32xf32>
    %106 = arith.subf %84, %105 : vector<8x32xf32>
    %cst_50 = arith.constant 9.99999974E-6 : f32
    %107 = vector.broadcast %cst_50 : f32 to vector<8x32xf32>
    %108 = arith.mulf %107, %106 : vector<8x32xf32>
    %cst_51 = arith.constant 9.99999974E-6 : f32
    %109 = vector.broadcast %cst_51 : f32 to vector<8x1xf32>
    %110 = arith.addf %104, %109 : vector<8x1xf32>
    %111 = tpu.reciprocal %110 {approx = true} : vector<8x1xf32> -> vector<8x1xf32>
    %112 = vector.broadcast %111 : vector<8x1xf32> to vector<8x32xf32>
    %113 = arith.mulf %108, %112 : vector<8x32xf32>
    %114 = arith.truncf %113 : vector<8x32xf32> to vector<8x32xbf16>
    %cst_52 = arith.constant dense<0.000000e+00> : vector<8x96xf32>
    %115 = tpu.matmul %114, %86, %cst_52 {dimension_numbers = #tpu.dot_dimension_numbers<[1], [0], [0], [1], [0, 0, 1, 1], [], []>} : vector<8x32xbf16>, vector<32x96xbf16>, vector<8x96xf32> -> vector<8x96xf32>
    %116 = vector.shape_cast %115 : vector<8x96xf32> to vector<8x12x8xf32>
    %117 = tpu.transpose %116, [1, 0, 2] : vector<8x12x8xf32> -> vector<12x8x8xf32>
    %118 = vector.extract_strided_slice %117 {offsets = [0, 0, 0], sizes = [4, 8, 8], strides = [1, 1, 1]} : vector<12x8x8xf32> to vector<4x8x8xf32>
    %119 = vector.extract_strided_slice %117 {offsets = [4, 0, 0], sizes = [4, 8, 8], strides = [1, 1, 1]} : vector<12x8x8xf32> to vector<4x8x8xf32>
    %120 = vector.extract_strided_slice %117 {offsets = [8, 0, 0], sizes = [4, 8, 8], strides = [1, 1, 1]} : vector<12x8x8xf32> to vector<4x8x8xf32>
    "tpu.trace_start"() <{level = 10 : i32, message = "hqd,hkd->hqk"}> : () -> ()
    %cst_53 = arith.constant dense<0.000000e+00> : vector<4x8x8xf32>
    %121 = tpu.matmul %118, %119, %cst_53 {dimension_numbers = #tpu.dot_dimension_numbers<[2], [2], [1], [1], [0, 0, 0, 1, 1, 1], [0], [0]>} : vector<4x8x8xf32>, vector<4x8x8xf32>, vector<4x8x8xf32> -> vector<4x8x8xf32>
    "tpu.trace_stop"() : () -> ()
    %cst_54 = arith.constant 0.353553385 : f32
    %122 = vector.broadcast %cst_54 : f32 to vector<4x8x8xf32>
    %123 = arith.mulf %121, %122 : vector<4x8x8xf32>
    %cst_55 = arith.constant dense<0xFF800000> : vector<4x8xf32>
    %124 = vector.multi_reduction <maximumf>, %123, %cst_55 [2] : vector<4x8x8xf32> to vector<4x8xf32>
    %125 = vector.shape_cast %124 : vector<4x8xf32> to vector<4x8x1xf32>
    %126 = vector.broadcast %125 : vector<4x8x1xf32> to vector<4x8x8xf32>
    %127 = arith.subf %123, %126 : vector<4x8x8xf32>
    %128 = math.exp %127 : vector<4x8x8xf32>
    %cst_56 = arith.constant dense<0.000000e+00> : vector<4x8xf32>
    %129 = vector.multi_reduction <add>, %128, %cst_56 [2] : vector<4x8x8xf32> to vector<4x8xf32>
    %130 = vector.shape_cast %129 : vector<4x8xf32> to vector<4x8x1xf32>
    %131 = tpu.reciprocal %130 {approx = true} : vector<4x8x1xf32> -> vector<4x8x1xf32>
    %132 = vector.broadcast %131 : vector<4x8x1xf32> to vector<4x8x8xf32>
    %133 = arith.mulf %128, %132 : vector<4x8x8xf32>
    "tpu.trace_start"() <{level = 10 : i32, message = "hqk,hkd->hqd"}> : () -> ()
    %cst_57 = arith.constant dense<0.000000e+00> : vector<4x8x8xf32>
    %134 = tpu.matmul %133, %120, %cst_57 {dimension_numbers = #tpu.dot_dimension_numbers<[2], [1], [1], [2], [0, 0, 0, 1, 1, 2], [0], [0]>} : vector<4x8x8xf32>, vector<4x8x8xf32>, vector<4x8x8xf32> -> vector<4x8x8xf32>
    "tpu.trace_stop"() : () -> ()
    %135 = tpu.transpose %134, [1, 0, 2] : vector<4x8x8xf32> -> vector<8x4x8xf32>
    %136 = vector.shape_cast %135 : vector<8x4x8xf32> to vector<8x32xf32>
    %137 = arith.truncf %136 : vector<8x32xf32> to vector<8x32xbf16>
    %cst_58 = arith.constant dense<0.000000e+00> : vector<8x32xf32>
    %138 = tpu.matmul %137, %88, %cst_58 {dimension_numbers = #tpu.dot_dimension_numbers<[1], [0], [0], [1], [0, 0, 1, 1], [], []>} : vector<8x32xbf16>, vector<32x32xbf16>, vector<8x32xf32> -> vector<8x32xf32>
    %139 = arith.addf %84, %138 : vector<8x32xf32>
    %cst_59 = arith.constant dense<0.000000e+00> : vector<8xf32>
    %140 = vector.multi_reduction <add>, %139, %cst_59 [1] : vector<8x32xf32> to vector<8xf32>
    %141 = vector.shape_cast %140 : vector<8xf32> to vector<8x1xf32>
    %cst_60 = arith.constant 3.200000e+01 : f32
    %142 = vector.broadcast %cst_60 : f32 to vector<8x1xf32>
    %143 = arith.divf %141, %142 : vector<8x1xf32>
    %144 = vector.broadcast %143 : vector<8x1xf32> to vector<8x32xf32>
    %145 = arith.subf %139, %144 : vector<8x32xf32>
    %146 = arith.mulf %145, %145 : vector<8x32xf32>
    %cst_61 = arith.constant dense<0.000000e+00> : vector<8xf32>
    %147 = vector.multi_reduction <add>, %146, %cst_61 [1] : vector<8x32xf32> to vector<8xf32>
    %148 = vector.shape_cast %147 : vector<8xf32> to vector<8x1xf32>
    %cst_62 = arith.constant 3.100000e+01 : f32
    %149 = vector.broadcast %cst_62 : f32 to vector<8x1xf32>
    %150 = arith.divf %148, %149 : vector<8x1xf32>
    %151 = math.sqrt %150 : vector<8x1xf32>
    %152 = vector.broadcast %143 : vector<8x1xf32> to vector<8x32xf32>
    %153 = arith.subf %139, %152 : vector<8x32xf32>
    %cst_63 = arith.constant 9.99999974E-6 : f32
    %154 = vector.broadcast %cst_63 : f32 to vector<8x32xf32>
    %155 = arith.mulf %154, %153 : vector<8x32xf32>
    %cst_64 = arith.constant 9.99999974E-6 : f32
    %156 = vector.broadcast %cst_64 : f32 to vector<8x1xf32>
    %157 = arith.addf %151, %156 : vector<8x1xf32>
    %158 = tpu.reciprocal %157 {approx = true} : vector<8x1xf32> -> vector<8x1xf32>
    %159 = vector.broadcast %158 : vector<8x1xf32> to vector<8x32xf32>
    %160 = arith.mulf %155, %159 : vector<8x32xf32>
    %161 = arith.truncf %160 : vector<8x32xf32> to vector<8x32xbf16>
    %cst_65 = arith.constant dense<0.000000e+00> : vector<8x64xf32>
    %162 = tpu.matmul %161, %90, %cst_65 {dimension_numbers = #tpu.dot_dimension_numbers<[1], [0], [0], [1], [0, 0, 1, 1], [], []>} : vector<8x32xbf16>, vector<32x64xbf16>, vector<8x64xf32> -> vector<8x64xf32>
    %cst_66 = arith.constant 0.000000e+00 : f32
    %163 = vector.broadcast %cst_66 : f32 to vector<8x64xf32>
    %164 = arith.maximumf %162, %163 : vector<8x64xf32>
    %165 = arith.truncf %164 : vector<8x64xf32> to vector<8x64xbf16>
    %cst_67 = arith.constant dense<0.000000e+00> : vector<8x32xf32>
    %166 = tpu.matmul %165, %92, %cst_67 {dimension_numbers = #tpu.dot_dimension_numbers<[1], [0], [0], [1], [0, 0, 1, 1], [], []>} : vector<8x64xbf16>, vector<64x32xbf16>, vector<8x32xf32> -> vector<8x32xf32>
    %167 = arith.addf %139, %166 : vector<8x32xf32>
    %cst_68 = arith.constant dense<0.000000e+00> : vector<8xf32>
    %168 = vector.multi_reduction <add>, %167, %cst_68 [1] : vector<8x32xf32> to vector<8xf32>
    %169 = vector.shape_cast %168 : vector<8xf32> to vector<8x1xf32>
    %cst_69 = arith.constant 3.200000e+01 : f32
    %170 = vector.broadcast %cst_69 : f32 to vector<8x1xf32>
    %171 = arith.divf %169, %170 : vector<8x1xf32>
    %172 = vector.broadcast %171 : vector<8x1xf32> to vector<8x32xf32>
    %173 = arith.subf %167, %172 : vector<8x32xf32>
    %174 = arith.mulf %173, %173 : vector<8x32xf32>
    %cst_70 = arith.constant dense<0.000000e+00> : vector<8xf32>
    %175 = vector.multi_reduction <add>, %174, %cst_70 [1] : vector<8x32xf32> to vector<8xf32>
    %176 = vector.shape_cast %175 : vector<8xf32> to vector<8x1xf32>
    %cst_71 = arith.constant 3.100000e+01 : f32
    %177 = vector.broadcast %cst_71 : f32 to vector<8x1xf32>
    %178 = arith.divf %176, %177 : vector<8x1xf32>
    %179 = math.sqrt %178 : vector<8x1xf32>
    %180 = vector.broadcast %171 : vector<8x1xf32> to vector<8x32xf32>
    %181 = arith.subf %167, %180 : vector<8x32xf32>
    %cst_72 = arith.constant 9.99999974E-6 : f32
    %182 = vector.broadcast %cst_72 : f32 to vector<8x32xf32>
    %183 = arith.mulf %182, %181 : vector<8x32xf32>
    %cst_73 = arith.constant 9.99999974E-6 : f32
    %184 = vector.broadcast %cst_73 : f32 to vector<8x1xf32>
    %185 = arith.addf %179, %184 : vector<8x1xf32>
    %186 = tpu.reciprocal %185 {approx = true} : vector<8x1xf32> -> vector<8x1xf32>
    %187 = vector.broadcast %186 : vector<8x1xf32> to vector<8x32xf32>
    %188 = arith.mulf %183, %187 : vector<8x32xf32>
    %189 = vector.shape_cast %188 : vector<8x32xf32> to vector<1x8x32xf32>
    %c0_74 = arith.constant 0 : index
    %c0_75 = arith.constant 0 : index
    %c0_76 = arith.constant 0 : index
    %190 = vector.load %arg6[%c0_74, %c0_75, %c0_76] : memref<1x8x32xf32, #tpu.memory_space<vmem>>, vector<1x8x32xf32>
    tpu.vector_store %arg6[%c0_74, %c0_75, %c0_76], %189 {strides = array<i32>} : memref<1x8x32xf32, #tpu.memory_space<vmem>>, vector<1x8x32xf32>,
    return
  }
  func.func @transform_0(%arg0: i32) -> (i32, i32, i32) {
    %c0_i32 = arith.constant 0 : i32
    %c0_i32_0 = arith.constant 0 : i32
    %c0_i32_1 = arith.constant 0 : i32
    return %arg0, %c0_i32, %c0_i32_0 : i32, i32, i32
  }
  func.func @transform_1(%arg0: i32) -> (i32, i32, i32) {
    %c0_i32 = arith.constant 0 : i32
    %c0_i32_0 = arith.constant 0 : i32
    %c0_i32_1 = arith.constant 0 : i32
    %c0_i32_2 = arith.constant 0 : i32
    return %c0_i32, %c0_i32_0, %c0_i32_1 : i32, i32, i32
  }
  func.func @transform_2(%arg0: i32) -> (i32, i32, i32) {
    %c0_i32 = arith.constant 0 : i32
    %c0_i32_0 = arith.constant 0 : i32
    %c0_i32_1 = arith.constant 0 : i32
    %c0_i32_2 = arith.constant 0 : i32
    return %c0_i32, %c0_i32_0, %c0_i32_1 : i32, i32, i32
  }
  func.func @transform_3(%arg0: i32) -> (i32, i32, i32) {
    %c0_i32 = arith.constant 0 : i32
    %c0_i32_0 = arith.constant 0 : i32
    %c0_i32_1 = arith.constant 0 : i32
    %c0_i32_2 = arith.constant 0 : i32
    return %c0_i32, %c0_i32_0, %c0_i32_1 : i32, i32, i32
  }
  func.func @transform_4(%arg0: i32) -> (i32, i32, i32) {
    %c0_i32 = arith.constant 0 : i32
    %c0_i32_0 = arith.constant 0 : i32
    %c0_i32_1 = arith.constant 0 : i32
    %c0_i32_2 = arith.constant 0 : i32
    return %c0_i32, %c0_i32_0, %c0_i32_1 : i32, i32, i32
  }
  func.func @transform_5(%arg0: i32) -> (i32, i32, i32) {
    %c0_i32 = arith.constant 0 : i32
    %c0_i32_0 = arith.constant 0 : i32
    %c0_i32_1 = arith.constant 0 : i32
    return %arg0, %c0_i32, %c0_i32_0 : i32, i32, i32
  }
}

</mosaic_0001>

<bundles_post_ra>
// kernel: tpu_custom_call.1
= control target key start
LH: loop header
LB: loop body
LE: loop exit
PB: predicated region body
PF: predicated region fallthrough
CT: control target
= control target key end

     0   :  { %10 = vsyncpa [#allocation3], 0  ;;  %s3385_s0 = inlined_call_operand.hbm [shape: f32[2,8,32], index: 0, kind: input, shape index: {}]   ;;  %s3386_s1 = inlined_call_operand.vmem [shape: bf16[2,32,96], index: 1, kind: input, shape index: {}]   ;;  %s3387_s2 = inlined_call_operand.vmem [shape: bf16[2,32,32], index: 2, kind: input, shape index: {}]   ;;  %s3388_s3 = inlined_call_operand.vmem [shape: bf16[2,32,64], index: 3, kind: input, shape index: {}]   ;;  %s3389_s4 = inlined_call_operand.vmem [shape: bf16[2,64,32], index: 4, kind: input, shape index: {}]   ;;  %s3390_s5 = inlined_call_operand.hbm [shape: f32[2,8,32], index: 5, kind: output, shape index: {}]  }
   0x1   :  { %12 = vsyncpa [#allocation3 + $0x1], 0 }
   0x2   :  { %13 = vsyncpa [#allocation4], 0 }
   0x3   :  { %15 = vsyncpa [#allocation4 + $0x1], 0  ;;  %s2691_s18 = smov 0   ;;  %s2693_s19 = smov 0  }
   0x4   :  { %s2695_s20 = smov 0   ;;  %s2697_s21 = smov 0  }
   0x5 LB: > { %s2712_s22 = sadd.s32 4294967295, %s2641_s21   ;;  %s2261_s23 = sadd.s32 4294967294, %s2641_s21   ;;  %s2641_s21 = sphi %s2697_s21, %s3416_s21   ;;  %s2637_s20 = sphi %s2695_s20, %s3415_s20   ;;  %s2633_s19 = sphi %s2693_s19, %s3414_s19   ;;  %s2629_s18 = sphi %s2691_s18, %s3413_s18  }
   0x6   : > { %s2716_s24 = sadd.s32 1, %s2641_s21   ;;  %s28_s25 = sadd.s32 1, %s2637_s20 }
   0x7   : > { %s25_s26 = ssub.s32 %s2641_s21, %s2716_s24  ;;  %p35_p0 = scmp.ne.s32.totalorder %s2637_s20, %s2633_s19 }
   0x8   : > { %p26_p1 = scmp.eq.s32.totalorder %s25_s26, 0  ;;  %p36_p2 = scmp.eq.s32.totalorder %s2641_s21, 0 }
   0x9   : > { %p41_p3 = scmp.ne.s32.totalorder %s2633_s19, %s2629_s18  ;;  %p42_p4 = scmp.eq.s32.totalorder %s2712_s22, 0 }
   0xa   : > { %s2728_s27 = scalar_select %p26_p1, %s2637_s20, %s28_s25  }
   0xb   : > { %p2730_p5 = por %p36_p2, %p35_p0  ;;  %p2734_p6 = por %p42_p4, %p41_p3 }
   0xc   : > { %p149_p7 = scmp.eq.s32.totalorder %s2712_s22, 1  ;;  %p155_p8 = scmp.eq.s32.totalorder %s2261_s23, 1 }
   0xd   : > { %p2437_p10 = scmp.lt.s32.totalorder %s2641_s21, 2  ;;  %s187_s7 = sand.u32 1, %s2637_s20  }
   0xe   : > { %p2741_p11 = por %p149_p7, %p35_p0  ;;  %p2745_p12 = por %p155_p8, %p41_p3 }
   0xf   : > { %s2265_s8 = sshll.u32 %s2641_s21, 3  ;;  %s2264_s9 = sshll.u32 %s187_s7, 3 }
  0x10   : > { %s195_s12 = scalar_lea.hbm %s3385_s0, %s2265_s8  ;;  %s191_s14 = scalar_lea.vmem [#allocation2], %s2264_s9 }
  0x11   : > { %s197_s13 = sshll.u32 %s195_s12, 4  ;;  %s199_s15 = sshll.u32 %s191_s14, 4  ;;  %s198_s13 = int_to_ptr.hbm [resolvable:$true] %s197_s13  ;;  %s200_s15 = int_to_ptr.vmem [resolvable:$true] %s199_s15 }
  0x12   : > { %p2756_p13 = pnand %p2437_p10, %p2730_p5  ;;  %p2266_p0 = scmp.ge.s32.totalorder %s2641_s21, 1 }
  0x13   : > { %p204_p1 = scmp.lt.s32.totalorder %s2641_s21, 3  ;;  %s188_s17 = scalar_lea.sflag [#allocation3], %s187_s7 }
  0x14   : > { %s2545_s23 = sshra.s32 %s198_s13, 4  ;;  %p2549_p3 = pneg %p2756_p13  ;;  %s2546_s23 = int_to_ptr.hbm [resolvable:$true] %s2545_s23 }
  0x15   : > { %s2547_s25 = scalar_lea.hbm %s2546_s23, 8  ;;  %s2552_s28 = scalar_lea.hbm %s3385_s0, 16 }
  0x16   : > { %p2548_p2 = scmp.ne.s32.totalorder %s2546_s23, %s2547_s25  ;;  %p2553_p5 = scmp.lt.s32.totalorder %s2546_s23, %s3385_s0 }
  0x17   : > { %p2554_p8 = scmp.lt.s32.totalorder %s2552_s28, %s2547_s25 }
  0x18   : > { %p2550_p4 = pnand %p2549_p3, %p2548_p2 }
  0x19   : > { %p2555_p10 = por %p2554_p8, %p2553_p5 }
  0x1a   : > { %p2551_p7 = pneg %p2550_p4 }
  0x1c   : > { %p2556_p9 = pnand %p2555_p10, %p2551_p7 }
  0x1e   : > { %2559 = shalt.err (!%p2556_p9)
}
  0x1f   : > { %2432 = dma.hbm_to_vmem [thread:$0]  (!%p2756_p13), %s198_s13, 128, %s200_s15, %s188_s17  }
  0x20   : > { %p205_p2 = pnand %p2266_p0, %p204_p1 }
  0x21   : > { %s2777_s7 = sand.u32 (!%p205_p2), 1, %s2633_s19  }
  0x22   : > { %208 = sbr.rel (%p205_p2) target bundleno = 4119 (0x1017), region = 40  ;;  %s3391_s11 = sshll.u32 (!%p205_p2), %s2777_s7, 3 }
  0x23   : > { %s211_s12 = scalar_lea.sflag (!%p205_p2), [#allocation3], %s2777_s7  ;;  %s214_s14 = scalar_lea.vmem (!%p205_p2), [#allocation2], %s3391_s11 }
  0x27   : > { %2620 = dma.done.wait (%p2734_p6), %s211_s12, 128  }
  0x28   : > { %2622 = vsyncadd (%p2734_p6), %s211_s12, 4294967168  ;;  %vm264_vm0 = vcmask 261120   ;;  %v2787_v0 = vld [vmem:[%s214_s14] sm:$0xff]  ;;  %v2643_v2 = vmov 32.0   ;;  %v2644_v14 = vmov 31.0   ;;  %s2645_s17 = smov 88  }
  0x29   : > { %v265_v1 = vsel %vm264_vm0, %v2787_v0, 0.0  ;;  %2489 = vrcp.f32 %v2643_v2  ;;  %v2406_v15 = vld [vmem:[%s3386_s1 + $0x8] sm:$0xff]  ;;  %v2405_v17 = vld [vmem:[%s3386_s1] sm:$0xff]  ;;  %s2646_s23 = smov 112   ;;  %s2647_s25 = smov 104   ;;  %vm369_vm5 = vcmask 1047556  }
  0x2a   : > { %266 = vadd.xlane.f32.xlu0 %v265_v1  ;;  %2491 = vrcp.f32 %v2644_v14  ;;  %327 = vmatpush.bf16.msra.mxu0 %v2406_v15  ;;  %s2648_s26 = smov 72   ;;  %s2649_s8 = smov 120   ;;  %v2653_v44 = vmov 1983009808   ;;  %v2654_v59 = vmov 1934713408  }
  0x2b   : > { %s2650_s28 = smov 96   ;;  %s2651_s9 = smov 80   ;;  %v374_v45 = vunpack.c.l.s4 %v2653_v44  ;;  %v422_v60 = vunpack.c.l.s4 %v2654_v59  ;;  %vm703_vm6 = vcmask 64512   ;;  %vm1071_vm7 = vcmask 130048  }
  0x2c   : > { %s3392_s10 = smov 64   ;;  %s3397_s12 = smov 40   ;;  %vm1073_vm8 = vcmask 195584   ;;  %vm1186_vm11 = vcmask 523264  }
  0x2d   : > { %v2825_v50 = vunpack.c.0.s8 %v374_v45  ;;  %s3393_s14 = smov 48   ;;  %s3398_s29 = smov 56  }
  0x2e   : > { %328 = vmatpush.bf16.msra.mxu0 %v2405_v17  ;;  %s3394_s13 = smov 16   ;;  %s3396_s15 = smov 24  }
  0x2f   : > { %v2490_v3 = vpop.eup %2489  ;;  %s3395_s16 = smov 8  }
  0x30   : > { %v269_v4 = vmul.f32 32.0, %v2490_v3  ;;  %vm273_vm1 = vweird.f32 %v2490_v3  ;;  %v2492_v16 = vpop.eup %2491 }
  0x31   : > { %v282_v18 = vmul.f32 31.0, %v2492_v16  ;;  %vm286_vm2 = vweird.f32 %v2492_v16 }
  0x32   : > { %v270_v5 = vsub.f32 1.0, %v269_v4 }
  0x33   : > { %v283_v19 = vsub.f32 1.0, %v282_v18 }
  0x34   : > { %v271_v6 = vmul.f32 %v2490_v3, %v270_v5 }
  0x35   : > { %v284_v20 = vmul.f32 %v2492_v16, %v283_v19 }
  0x36   : > { %v272_v7 = vadd.f32 %v2490_v3, %v271_v6 }
  0x37   : > { %v285_v21 = vadd.f32 %v2492_v16, %v284_v20 }
  0x38   : > { %v2791_v8 = vsel %vm273_vm1, %v2490_v3, %v272_v7 }
  0x39   : > { %v2802_v22 = vsel %vm286_vm2, %v2492_v16, %v285_v21 }
  0x9d   : > { %v267_v9 = vpop.xlane.xlu0 %266 }
  0x9e   : > { %v275_v10 = vmul.f32 %v2791_v8, %v267_v9 }
  0xa0   : > { %v276_v11 = vsub.f32 %v2787_v0, %v275_v10 }
  0xa2   : > { %v277_v12 = vmul.f32 %v276_v11, %v276_v11  ;;  %v301_v36 = vmul.f32 1e-05, %v276_v11 }
  0xa4   : > { %v278_v13 = vsel %vm264_vm0, %v277_v12, 0.0 }
  0xa5   : > { %279 = vadd.xlane.f32.xlu0 %v278_v13  ;;  %v2839_v13 = vunpack.c.0.s8 %v422_v60 }
 0x118   : > { %v280_v23 = vpop.xlane.xlu0 %279 }
 0x119   : > { %v288_v24 = vmul.f32 %v2802_v22, %v280_v23 }
 0x11b   : > { %2493 = vrsqrt.f32 %v288_v24  ;;  %vm296_vm3 = vcmp.eq.f32.partialorder %v288_v24, inf  ;;  %v299_v32 = vand.u32 2147483648, %v288_v24  ;;  %vm298_vm4 = vcmp.eq.f32.partialorder %v288_v24, 0.0 }
 0x121   : > { %v2494_v25 = vpop.eup %2493 }
 0x122   : > { %v290_v26 = vmul.f32 %v2494_v25, %v288_v24 }
 0x124   : > { %v291_v27 = vmul.f32 %v2494_v25, %v290_v26 }
 0x126   : > { %v292_v28 = vmul.f32 0.5, %v291_v27 }
 0x128   : > { %v293_v29 = vsub.f32 1.5, %v292_v28 }
 0x12a   : > { %v294_v30 = vmul.f32 %v2494_v25, %v293_v29 }
 0x12c   : > { %v295_v31 = vmul.f32 %v294_v30, %v288_v24 }
 0x12e   : > { %v297_v33 = vsel %vm296_vm3, %v288_v24, %v295_v31 }
 0x12f   : > { %v300_v34 = vsel %vm298_vm4, %v299_v32, %v297_v33 }
 0x130   : > { %v302_v35 = vadd.f32 1e-05, %v300_v34 }
 0x132   : > { %2495 = vrcp.f32 %v302_v35 }
 0x138   : > { %v2496_v37 = vpop.eup %2495 }
 0x139   : > { %v304_v38 = vmul.f32 %v2496_v37, %v301_v36 }
 0x13b   : > { %v305_v39 = vpack.c.bf16 %v304_v38, %v304_v38 }
 0x13d   : > { %2277 = vmatmul.msk.bf16.vlgmr.msra.gmra.mxu0 %vm264_vm0, %v305_v39 }
 0x1ba   : > { %v2806_v40 = vpop.f32.mrf.mxu0 }
 0x1bb   : > { %347 = vrot.lane.b32.xlu0 %v2806_v40, %s2645_s17  ;;  %338 = vrot.lane.b32.xlu2 %v2806_v40, %s2646_s23  ;;  %v371_v49 = vrot.slane %v2806_v40, 4 }
 0x1bc   : > { %341 = vrot.lane.b32.xlu1 %v2806_v40, %s2647_s25 }
 0x1c2   : > { %v332_v41 = vpop.f32.mrf.mxu0 }
 0x1c3   : > { %353 = vrot.lane.b32.xlu2 %v2806_v40, %s2648_s26 }
 0x1c4   : > { %335 = vrot.lane.b32.xlu1 %v2806_v40, %s2649_s8 }
 0x1cb   : > { %344 = vrot.lane.b32.xlu2 %v2806_v40, %s2650_s28 }
 0x1cc   : > { %350 = vrot.lane.b32.xlu1 %v2806_v40, %s2651_s9 }
 0x1d4   : > { %356 = vrot.lane.b32.xlu1 %v2806_v40, %s3392_s10  ;;  %s2402_s10 = sshll.u32 %s2712_s22, 3 }
 0x215   : > { %v339_v42 = vpop.permute.xlu2 %338 }
 0x216   : > { %v368_v47 = vrot.slane %v339_v42, 4  ;;  %v372_v51 = vsel %vm369_vm5, %v339_v42, %v371_v49 }
 0x217   : > { %v380_v58 = vperm.slane %v372_v51, %v2825_v50 }
 0x218   : > { %v370_v54 = vsel %vm369_vm5, %v368_v47, %v2806_v40 }
 0x219   : > { %v376_v62 = vperm.slane %v370_v54, %v2825_v50  ;;  %v431_v7 = vrot.slane %v380_v58, 4 }
 0x21b   : > { %v419_v11 = vrot.slane %v376_v62, 4 }
 0x21d   : > { %v354_v46 = vpop.permute.xlu2 %353 }
 0x21e   : > { %v405_v63 = vrot.slane %v354_v46, 4 }
 0x225   : > { %v345_v3 = vpop.permute.xlu2 %344 }
 0x226   : > { %v395_v12 = vrot.slane %v345_v3, 4 }
 0x22d   : > { %v348_v48 = vpop.permute.xlu0 %347 }
 0x22e   : > { %v342_v43 = vpop.permute.xlu1 %341  ;;  %v407_v52 = vrot.slane %v348_v48, 4  ;;  %v406_v6 = vsel %vm369_vm5, %v405_v63, %v348_v48 }
 0x22f   : > { %v381_v53 = vrot.slane %v342_v43, 4  ;;  %v412_v14 = vperm.slane %v406_v6, %v2825_v50 }
 0x230   : > { %v408_v1 = vsel %vm369_vm5, %v354_v46, %v407_v52 }
 0x231   : > { %v416_v9 = vperm.slane %v408_v1, %v2825_v50  ;;  %v441_v29 = vrot.slane %v412_v14, 4 }
 0x233   : > { %v453_v20 = vrot.slane %v416_v9, 4 }
 0x236   : > { %v336_v55 = vpop.permute.xlu1 %335 }
 0x237   : > { %v382_v56 = vsel %vm369_vm5, %v381_v53, %v336_v55  ;;  %v383_v57 = vrot.slane %v336_v55, 4 }
 0x238   : > { %v388_v61 = vperm.slane %v382_v56, %v2825_v50 }
 0x239   : > { %v384_v2 = vsel %vm369_vm5, %v342_v43, %v383_v57 }
 0x23a   : > { %v392_v4 = vperm.slane %v384_v2, %v2825_v50  ;;  %v417_v5 = vrot.slane %v388_v61, 4  ;;  %v420_v21 = vsel %vm369_vm5, %v388_v61, %v419_v11 }
 0x23b   : > { %v428_v31 = vperm.slane %v420_v21, %v2839_v13 }
 0x23c   : > { %v429_v10 = vrot.slane %v392_v4, 4  ;;  %v418_v15 = vsel %vm369_vm5, %v417_v5, %v376_v62  ;;  %v432_v17 = vsel %vm369_vm5, %v392_v4, %v431_v7 }
 0x23d   : > { %v424_v25 = vperm.slane %v418_v15, %v2839_v13  ;;  %v440_v26 = vperm.slane %v432_v17, %v2839_v13  ;;  %v471_v47 = vrot.slane %v428_v31, 4 }
 0x23e   : > { %v430_v16 = vsel %vm369_vm5, %v429_v10, %v380_v58  ;;  %v351_v18 = vpop.permute.xlu1 %350 }
 0x23f   : > { %v393_v19 = vrot.slane %v351_v18, 4  ;;  %v436_v23 = vperm.slane %v430_v16, %v2839_v13  ;;  %v396_v24 = vsel %vm369_vm5, %v351_v18, %v395_v12  ;;  %v467_v38 = vrot.slane %v424_v25, 4 }
 0x240   : > { %v404_v28 = vperm.slane %v396_v24, %v2825_v50  ;;  %v479_v39 = vrot.slane %v440_v26, 4 }
 0x241   : > { %v394_v27 = vsel %vm369_vm5, %v393_v19, %v345_v3  ;;  %v475_v34 = vrot.slane %v436_v23, 4 }
 0x242   : > { %v400_v30 = vperm.slane %v394_v27, %v2825_v50  ;;  %v454_v32 = vsel %vm369_vm5, %v453_v20, %v404_v28  ;;  %v455_v33 = vrot.slane %v404_v28, 4 }
 0x243   : > { %v460_v37 = vperm.slane %v454_v32, %v2839_v13 }
 0x244   : > { %v442_v35 = vsel %vm369_vm5, %v441_v29, %v400_v30  ;;  %v443_v36 = vrot.slane %v400_v30, 4  ;;  %v456_v42 = vsel %vm369_vm5, %v416_v9, %v455_v33 }
 0x245   : > { %v448_v41 = vperm.slane %v442_v35, %v2839_v13  ;;  %v464_v44 = vperm.slane %v456_v42, %v2839_v13  ;;  %v473_v45 = vrot.slane %v460_v37, 4  ;;  %v476_v46 = vsel %vm369_vm5, %v460_v37, %v475_v34 }
 0x246   : > { %v444_v43 = vsel %vm369_vm5, %v412_v14, %v443_v36  ;;  %v575_v55 = vrot.slane %v476_v46, 4 }
 0x247   : > { %v452_v48 = vperm.slane %v444_v43, %v2839_v13  ;;  %v465_v49 = vrot.slane %v448_v41, 4  ;;  %v468_v51 = vsel %vm369_vm5, %v448_v41, %v467_v38  ;;  %v474_v52 = vsel %vm369_vm5, %v473_v45, %v436_v23 }
 0x248   : > { %v477_v53 = vrot.slane %v464_v44, 4  ;;  %v480_v54 = vsel %vm369_vm5, %v464_v44, %v479_v39  ;;  %v563_v57 = vrot.slane %v474_v52, 4  ;;  %v551_v63 = vrot.slane %v468_v51, 4 }
 0x249   : > { %v469_v56 = vrot.slane %v452_v48, 4  ;;  %v573_v58 = vrot.slane %v480_v54, 4  ;;  %v466_v59 = vsel %vm369_vm5, %v465_v49, %v424_v25  ;;  %v472_v60 = vsel %vm369_vm5, %v452_v48, %v471_v47 }
 0x24a   : > { %v478_v61 = vsel %vm369_vm5, %v477_v53, %v440_v26  ;;  %v539_v62 = vrot.slane %v466_v59, 4  ;;  %v549_v3 = vrot.slane %v472_v60, 4  ;;  %v552_v7 = vsel %vm369_vm5, %v472_v60, %v551_v63 }
 0x24b   : > { %v574_v1 = vsel %vm369_vm5, %v573_v58, %v476_v46  ;;  %v470_v2 = vsel %vm369_vm5, %v469_v56, %v428_v31  ;;  %v561_v4 = vrot.slane %v478_v61, 4  ;;  %v564_v9 = vsel %vm369_vm5, %v478_v61, %v563_v57 }
 0x24c   : > { %v537_v5 = vrot.slane %v470_v2, 4  ;;  %v540_v6 = vsel %vm369_vm5, %v470_v2, %v539_v62  ;;  %v560_v11 = vperm.slane %v552_v7, %v2825_v50  ;;  %v572_v12 = vperm.slane %v564_v9, %v2825_v50 }
 0x24d   : > { %v548_v10 = vperm.slane %v540_v6, %v2825_v50  ;;  %v576_v14 = vsel %vm369_vm5, %v480_v54, %v575_v55  ;;  %v550_v17 = vsel %vm369_vm5, %v549_v3, %v468_v51  ;;  %v562_v18 = vsel %vm369_vm5, %v561_v4, %v474_v52 }
 0x24e   : > { %v584_v15 = vperm.slane %v576_v14, %v2825_v50  ;;  %v538_v16 = vsel %vm369_vm5, %v537_v5, %v466_v59  ;;  %v597_v19 = vrot.slane %v560_v11, 4  ;;  %v556_v21 = vperm.slane %v550_v17, %v2825_v50  ;;  %v357_v17 = vpop.permute.xlu1 %356 }
 0x24f   : > { %v544_v20 = vperm.slane %v538_v16, %v2825_v50  ;;  %v568_v23 = vperm.slane %v562_v18, %v2825_v50  ;;  %v580_v25 = vperm.slane %v574_v1, %v2825_v50  ;;  %v599_v26 = vrot.slane %v548_v10, 4 }
 0x250   : > { %v621_v24 = vrot.slane %v584_v15, 4  ;;  %v623_v27 = vrot.slane %v572_v12, 4  ;;  %v598_v28 = vsel %vm369_vm5, %v597_v19, %v548_v10  ;;  %v585_v29 = vrot.slane %v556_v21, 4 }
 0x251   : > { %v587_v30 = vrot.slane %v544_v20, 4  ;;  %v611_v31 = vrot.slane %v568_v23, 4  ;;  %v604_v32 = vperm.slane %v598_v28, %v2839_v13  ;;  %v609_v34 = vrot.slane %v580_v25, 4 }
 0x252   : > { %v622_v33 = vsel %vm369_vm5, %v621_v24, %v572_v12  ;;  %v600_v35 = vsel %vm369_vm5, %v560_v11, %v599_v26  ;;  %v586_v37 = vsel %vm369_vm5, %v585_v29, %v544_v20  ;;  %v624_v39 = vsel %vm369_vm5, %v584_v15, %v623_v27 }
 0x253   : > { %v628_v36 = vperm.slane %v622_v33, %v2839_v13  ;;  %v608_v38 = vperm.slane %v600_v35, %v2839_v13  ;;  %v643_v41 = vrot.slane %v604_v32, 4  ;;  %v592_v42 = vperm.slane %v586_v37, %v2839_v13 }
 0x254   : > { %v610_v43 = vsel %vm369_vm5, %v609_v34, %v568_v23  ;;  %v632_v44 = vperm.slane %v624_v39, %v2839_v13  ;;  %v588_v52 = vsel %vm369_vm5, %v556_v21, %v587_v30  ;;  %v612_v56 = vsel %vm369_vm5, %v580_v25, %v611_v31 }
 0x255   : > { %v641_v45 = vrot.slane %v628_v36, 4  ;;  %v616_v46 = vperm.slane %v610_v43, %v2839_v13  ;;  %v647_v47 = vrot.slane %v608_v38, 4  ;;  %v644_v48 = vsel %vm369_vm5, %v628_v36, %v643_v41 }
 0x256   : > { %v645_v49 = vrot.slane %v632_v44, 4  ;;  %v635_v51 = vrot.slane %v592_v42, 4  ;;  %2280 = vmatpush.xpose.msk.msra.mxu3 %vm703_vm6, %v644_v48  ;;  %v620_v60 = vperm.slane %v612_v56, %v2839_v13  ;;  %v596_v61 = vperm.slane %v588_v52, %v2839_v13 }
 0x257   : > { %v642_v53 = vsel %vm369_vm5, %v641_v45, %v604_v32  ;;  %v633_v54 = vrot.slane %v616_v46, 4  ;;  %v648_v55 = vsel %vm369_vm5, %v632_v44, %v647_v47  ;;  %v483_v36 = vrot.slane %v357_v17, 4 }
 0x258   : > { %2278 = vmatpush.xpose.msk.msra.mxu1 %vm703_vm6, %v642_v53  ;;  %v646_v57 = vsel %vm369_vm5, %v645_v49, %v608_v38  ;;  %v636_v58 = vsel %vm369_vm5, %v616_v46, %v635_v51  ;;  %v637_v62 = vrot.slane %v620_v60, 4  ;;  %v639_v63 = vrot.slane %v596_v61, 4 }
 0x259   : > { %v634_v59 = vsel %vm369_vm5, %v633_v54, %v592_v42  ;;  %2281 = vmatmul.msk.f32.vlgmr.msra.gmra.mxu3 %vm703_vm6, %v636_v58 }
 0x25a   : > { %2282 = vmatpush.xpose.msk.msrb.mxu3 %vm703_vm6, %v646_v57  ;;  %v638_v1 = vsel %vm369_vm5, %v637_v62, %v596_v61  ;;  %v640_v2 = vsel %vm369_vm5, %v620_v60, %v639_v63 }
 0x25b   : > { %2279 = vmatmul.msk.f32.vlgmr.msra.gmra.mxu1 %vm703_vm6, %v634_v59 }
 0x25c   : > { %2284 = vmatpush.xpose.msk.msrb.mxu1 %vm703_vm6, %v648_v55 }
 0x261   : > { %2283 = vmatmul.msk.f32.vlgmr.msrb.gmra.mxu3 %vm703_vm6, %v638_v1 }
 0x263   : > { %2285 = vmatmul.msk.f32.vlgmr.msrb.gmra.mxu1 %vm703_vm6, %v640_v2 }
 0x2d8   : > { %v727_v3 = vpop.f32.mrf.mxu1 }
 0x2d9   : > { %v808_v4 = vmul.f32 0.35355338, %v727_v3 }
 0x2db   : > { %v812_v5 = vsel %vm703_vm6, %v808_v4, -inf }
 0x2dc   : > { %813 = vmax.xlane.f32.xlu1 %v812_v5  ;;  %v753_v6 = vpop.f32.mrf.mxu3 }
 0x2dd   : > { %v809_v7 = vmul.f32 0.35355338, %v753_v6 }
 0x2df   : > { %v815_v10 = vsel %vm703_vm6, %v809_v7, -inf }
 0x2e0   : > { %v805_v9 = vpop.f32.mrf.mxu1  ;;  %816 = vmax.xlane.f32.xlu0 %v815_v10 }
 0x2e1   : > { %v811_v11 = vmul.f32 0.35355338, %v805_v9 }
 0x2e3   : > { %v821_v12 = vsel %vm703_vm6, %v811_v11, -inf }
 0x2e4   : > { %822 = vmax.xlane.f32.xlu2 %v821_v12  ;;  %v779_v14 = vpop.f32.mrf.mxu3 }
 0x2e5   : > { %v810_v15 = vmul.f32 0.35355338, %v779_v14 }
 0x2e7   : > { %v818_v16 = vsel %vm703_vm6, %v810_v15, -inf }
 0x2ec   : > { %819 = vmax.xlane.f32.xlu2 %v818_v16 }
 0x2f4   : > { %362 = vrot.lane.b32.xlu0 %v2806_v40, %s3393_s14 }
 0x2f5   : > { %365 = vrot.lane.b32.xlu1 %v2806_v40, %s3397_s12 }
 0x304   : > { %359 = vrot.lane.b32.xlu2 %v2806_v40, %s3398_s29 }
 0x34f   : > { %v814_v18 = vpop.xlane.xlu1 %813 }
 0x350   : > { %v824_v19 = vsub.f32 %v808_v4, %v814_v18 }
 0x352   : > { %v828_v20 = vmul.f32 1.442695, %v824_v19 }
 0x353   : > { %v817_v21 = vpop.xlane.xlu0 %816 }
 0x354   : > { %2497 = vpow2.f32 %v828_v20  ;;  %v825_v23 = vsub.f32 %v809_v7, %v817_v21 }
 0x356   : > { %v830_v24 = vmul.f32 1.442695, %v825_v23 }
 0x357   : > { %v823_v25 = vpop.xlane.xlu2 %822 }
 0x358   : > { %v827_v26 = vsub.f32 %v811_v11, %v823_v25  ;;  %2499 = vpow2.f32 %v830_v24 }
 0x35a   : > { %v2928_v27 = vpop.eup %2497  ;;  %v834_v28 = vmul.f32 1.442695, %v827_v26 }
 0x35b   : > { %v836_v29 = vsel %vm703_vm6, %v2928_v27, 0.0 }
 0x35c   : > { %2501 = vpow2.f32 %v834_v28  ;;  %837 = vadd.xlane.f32.xlu2 %v836_v29 }
 0x35e   : > { %v2932_v40 = vpop.eup %2499 }
 0x35f   : > { %v820_v30 = vpop.xlane.xlu2 %819  ;;  %v839_v32 = vsel %vm703_vm6, %v2932_v40, 0.0 }
 0x360   : > { %v826_v31 = vsub.f32 %v810_v15, %v820_v30  ;;  %840 = vadd.xlane.f32.xlu1 %v839_v32 }
 0x362   : > { %v2936_v33 = vpop.eup %2501  ;;  %v832_v34 = vmul.f32 1.442695, %v826_v31 }
 0x363   : > { %v845_v35 = vsel %vm703_vm6, %v2936_v33, 0.0 }
 0x364   : > { %2503 = vpow2.f32 %v832_v34  ;;  %846 = vadd.xlane.f32.xlu0 %v845_v35 }
 0x366   : > { %v363_v42 = vpop.permute.xlu0 %362 }
 0x367   : > { %v366_v37 = vpop.permute.xlu1 %365  ;;  %v360_v38 = vpop.permute.xlu2 %359  ;;  %v481_v43 = vrot.slane %v363_v42, 4  ;;  %v484_v44 = vsel %vm369_vm5, %v363_v42, %v483_v36 }
 0x368   : > { %v493_v39 = vrot.slane %v366_v37, 4  ;;  %v495_v41 = vrot.slane %v360_v38, 4  ;;  %v492_v48 = vperm.slane %v484_v44, %v2825_v50 }
 0x369   : > { %v482_v52 = vsel %vm369_vm5, %v481_v43, %v357_v17 }
 0x36a   : > { %v2941_v45 = vpop.eup %2503  ;;  %v494_v46 = vsel %vm369_vm5, %v493_v39, %v360_v38  ;;  %v496_v47 = vsel %vm369_vm5, %v366_v37, %v495_v41  ;;  %v488_v54 = vperm.slane %v482_v52, %v2825_v50  ;;  %v519_v55 = vrot.slane %v492_v48, 4 }
 0x36b   : > { %v500_v49 = vperm.slane %v494_v46, %v2825_v50  ;;  %v504_v51 = vperm.slane %v496_v47, %v2825_v50  ;;  %v842_v53 = vsel %vm703_vm6, %v2941_v45, 0.0 }
 0x36c   : > { %843 = vadd.xlane.f32.xlu2 %v842_v53  ;;  %v507_v58 = vrot.slane %v488_v54, 4 }
 0x36d   : > { %v505_v56 = vrot.slane %v500_v49, 4  ;;  %v517_v57 = vrot.slane %v504_v51, 4  ;;  %v520_v59 = vsel %vm369_vm5, %v504_v51, %v519_v55 }
 0x36e   : > { %v528_v62 = vperm.slane %v520_v59, %v2839_v13  ;;  %v508_v63 = vsel %vm369_vm5, %v500_v49, %v507_v58 }
 0x36f   : > { %v506_v60 = vsel %vm369_vm5, %v505_v56, %v488_v54  ;;  %v518_v61 = vsel %vm369_vm5, %v517_v57, %v492_v48  ;;  %v516_v3 = vperm.slane %v508_v63, %v2839_v13 }
 0x370   : > { %v512_v1 = vperm.slane %v506_v60, %v2839_v13  ;;  %v524_v2 = vperm.slane %v518_v61, %v2839_v13  ;;  %v535_v4 = vrot.slane %v528_v62, 4 }
 0x371   : > { %v531_v7 = vrot.slane %v516_v3, 4 }
 0x372   : > { %v533_v5 = vrot.slane %v524_v2, 4  ;;  %v529_v6 = vrot.slane %v512_v1, 4  ;;  %v536_v9 = vsel %vm369_vm5, 0.0, %v535_v4  ;;  %v660_v10 = vsel %vm369_vm5, %v535_v4, %v524_v2 }
 0x373   : > { %v664_v11 = vperm.slane %v660_v10, %v2825_v50  ;;  %v665_v12 = vrot.slane %v536_v9, 4  ;;  %v532_v14 = vsel %vm369_vm5, 0.0, %v531_v7  ;;  %v649_v16 = vsel %vm369_vm5, %v531_v7, %v512_v1 }
 0x374   : > { %v534_v15 = vsel %vm369_vm5, 0.0, %v533_v5  ;;  %v654_v17 = vrot.slane %v532_v14, 4  ;;  %v653_v19 = vperm.slane %v649_v16, %v2825_v50  ;;  %v530_v21 = vsel %vm369_vm5, 0.0, %v529_v6 }
 0x375   : > { %v666_v18 = vsel %vm369_vm5, %v665_v12, %v534_v15  ;;  %v685_v20 = vrot.slane %v664_v11, 4 }
 0x376   : > { %v670_v23 = vperm.slane %v666_v18, %v2825_v50  ;;  %v655_v24 = vsel %vm369_vm5, %v654_v17, %v530_v21  ;;  %v673_v25 = vrot.slane %v653_v19, 4 }
 0x377   : > { %v659_v26 = vperm.slane %v655_v24, %v2825_v50 }
 0x378   : > { %v686_v28 = vsel %vm369_vm5, %v670_v23, %v685_v20  ;;  %v683_v29 = vrot.slane %v670_v23, 4 }
 0x379   : > { %v694_v30 = vperm.slane %v686_v28, %v2839_v13  ;;  %v674_v31 = vsel %vm369_vm5, %v659_v26, %v673_v25  ;;  %v671_v32 = vrot.slane %v659_v26, 4 }
 0x37a   : > { %v684_v34 = vsel %vm369_vm5, %v683_v29, %v664_v11  ;;  %v682_v35 = vperm.slane %v674_v31, %v2839_v13 }
 0x37b   : > { %v699_v36 = vrot.slane %v694_v30, 4  ;;  %v690_v37 = vperm.slane %v684_v34, %v2839_v13  ;;  %v672_v38 = vsel %vm369_vm5, %v671_v32, %v653_v19 }
 0x37c   : > { %v678_v41 = vperm.slane %v672_v38, %v2839_v13  ;;  %v701_v43 = vrot.slane %v682_v35, 4 }
 0x37d   : > { %v700_v39 = vsel %vm369_vm5, %v699_v36, %v682_v35  ;;  %v695_v42 = vrot.slane %v690_v37, 4 }
 0x37e   : > { %920 = vmatpush.msra.mxu1 %v700_v39  ;;  %v697_v46 = vrot.slane %v678_v41, 4  ;;  %v702_v47 = vsel %vm369_vm5, %v694_v30, %v701_v43 }
 0x37f   : > { %v696_v44 = vsel %vm369_vm5, %v695_v42, %v678_v41 }
 0x380   : > { %874 = vmatpush.msra.mxu2 %v696_v44  ;;  %v698_v48 = vsel %vm369_vm5, %v690_v37, %v697_v46 }
 0x381   : > { %897 = vmatpush.msra.mxu3 %v698_v48 }
 0x382   : > { %943 = vmatpush.msrb.mxu2 %v702_v47 }
 0x3cf   : > { %v838_v49 = vpop.xlane.xlu2 %837 }
 0x3d0   : > { %2505 = vrcp.f32 %v838_v49 }
 0x3d3   : > { %v841_v51 = vpop.xlane.xlu1 %840 }
 0x3d4   : > { %2507 = vrcp.f32 %v841_v51 }
 0x3d6   : > { %v2506_v52 = vpop.eup %2505 }
 0x3d7   : > { %v847_v53 = vpop.xlane.xlu0 %846  ;;  %v852_v54 = vmul.f32 %v2506_v52, %v2928_v27 }
 0x3d8   : > { %2509 = vrcp.f32 %v847_v53 }
 0x3d9   : > { %2286 = vmatmul.msk.f32.vlgmr.msra.gmra.mxu2 %vm703_vm6, %v852_v54 }
 0x3da   : > { %v2508_v55 = vpop.eup %2507 }
 0x3db   : > { %v853_v56 = vmul.f32 %v2508_v55, %v2932_v40 }
 0x3dd   : > { %2287 = vmatmul.msk.f32.vlgmr.msra.gmra.mxu3 %vm703_vm6, %v853_v56 }
 0x3de   : > { %v2510_v57 = vpop.eup %2509 }
 0x3df   : > { %v844_v58 = vpop.xlane.xlu2 %843  ;;  %v855_v59 = vmul.f32 %v2510_v57, %v2936_v33 }
 0x3e0   : > { %2511 = vrcp.f32 %v844_v58 }
 0x3e1   : > { %2289 = vmatmul.msk.f32.vlgmr.msrb.gmra.mxu2 %vm703_vm6, %v855_v59 }
 0x3e6   : > { %v2512_v60 = vpop.eup %2511 }
 0x3e7   : > { %v854_v61 = vmul.f32 %v2512_v60, %v2941_v45 }
 0x3e9   : > { %2288 = vmatmul.msk.f32.vlgmr.msra.gmra.mxu1 %vm703_vm6, %v854_v61 }
 0x45c   : > { %v876_v27 = vpop.f32.mrf.mxu2 }
 0x45d   : > { %v950_v2 = vrot.slane %v876_v27, 4 }
 0x460   : > { %v899_v62 = vpop.f32.mrf.mxu3 }
 0x461   : > { %v962_v63 = vrot.slane %v899_v62, 4 }
 0x464   : > { %v945_v1 = vpop.f32.mrf.mxu2 }
 0x465   : > { %v960_v40 = vrot.slane %v945_v1, 4  ;;  %v963_v3 = vsel %vm369_vm5, %v945_v1, %v962_v63 }
 0x466   : > { %v971_v4 = vperm.slane %v963_v3, %v2825_v50  ;;  %v922_v5 = vpop.f32.mrf.mxu1 }
 0x467   : > { %v961_v33 = vsel %vm369_vm5, %v960_v40, %v899_v62  ;;  %v948_v6 = vrot.slane %v922_v5, 4  ;;  %v951_v7 = vsel %vm369_vm5, %v922_v5, %v950_v2  ;;  %v2407_v5 = vld [vmem:[%s3387_s2] sm:$0xff] }
 0x468   : > { %v967_v45 = vperm.slane %v961_v33, %v2825_v50  ;;  %v984_v9 = vrot.slane %v971_v4, 4  ;;  %v959_v10 = vperm.slane %v951_v7, %v2825_v50 }
 0x469   : > { %v949_v11 = vsel %vm369_vm5, %v948_v6, %v876_v27 }
 0x46a   : > { %v972_v12 = vrot.slane %v967_v45, 4  ;;  %v955_v14 = vperm.slane %v949_v11, %v2825_v50  ;;  %v985_v15 = vsel %vm369_vm5, %v984_v9, %v959_v10  ;;  %v986_v16 = vrot.slane %v959_v10, 4 }
 0x46b   : > { %v991_v17 = vperm.slane %v985_v15, %v2839_v13 }
 0x46c   : > { %v973_v18 = vsel %vm369_vm5, %v972_v12, %v955_v14  ;;  %v974_v19 = vrot.slane %v955_v14, 4  ;;  %v987_v20 = vsel %vm369_vm5, %v971_v4, %v986_v16  ;;  %v2408_v4 = vld [vmem:[%s3387_s2 + $0x8] sm:$0xff] }
 0x46d   : > { %v979_v21 = vperm.slane %v973_v18, %v2839_v13  ;;  %v995_v23 = vperm.slane %v987_v20, %v2839_v13  ;;  %v1000_v26 = vrot.slane %v991_v17, 4  ;;  %1097 = vmatpush.bf16.msrb.mxu3 %v2408_v4 }
 0x46e   : > { %v975_v24 = vsel %vm369_vm5, %v967_v45, %v974_v19 }
 0x46f   : > { %v983_v25 = vperm.slane %v975_v24, %v2839_v13  ;;  %v1002_v28 = vrot.slane %v995_v23, 4  ;;  %v996_v29 = vrot.slane %v979_v21, 4  ;;  %v1001_v37 = vsel %vm369_vm5, 0.0, %v1000_v26  ;;  %v2410_v23 = vld [vmem:[%s3388_s3 + $0x8] sm:$0xff]  ;;  %v2414_v26 = vld [vmem:[%s3389_s4 + $0x18] sm:$0xff] }
 0x470   : > { %1153 = vmatpush.bf16.msrb.mxu0 %v2410_v23  ;;  %1194 = vmatpush.bf16.msrb.mxu1 %v2414_v26 }
 0x471   : > { %v998_v30 = vrot.slane %v983_v25, 4  ;;  %v1003_v31 = vsel %vm369_vm5, 0.0, %v1002_v28  ;;  %v1015_v32 = vsel %vm369_vm5, %v1002_v28, %v991_v17  ;;  %v997_v44 = vsel %vm369_vm5, 0.0, %v996_v29  ;;  %1098 = vmatpush.bf16.msrb.mxu3 %v2407_v5  ;;  %v2413_v28 = vld [vmem:[%s3389_s4 + $0x10] sm:$0xff] }
 0x472   : > { %v1019_v34 = vperm.slane %v1015_v32, %v2825_v50  ;;  %v1020_v35 = vrot.slane %v1003_v31, 4  ;;  %v2412_v31 = vld [vmem:[%s3389_s4 + $0x8] sm:$0xff] }
 0x473   : > { %v999_v36 = vsel %vm369_vm5, 0.0, %v998_v30  ;;  %v1004_v38 = vsel %vm369_vm5, %v998_v30, %v979_v21 }
 0x474   : > { %v1021_v39 = vsel %vm369_vm5, %v1020_v35, %v1001_v37  ;;  %v1008_v41 = vperm.slane %v1004_v38, %v2825_v50  ;;  %v1009_v42 = vrot.slane %v999_v36, 4  ;;  %v1040_v43 = vrot.slane %v1019_v34, 4  ;;  %1195 = vmatpush.bf16.msrb.mxu1 %v2413_v28 }
 0x475   : > { %v1025_v46 = vperm.slane %v1021_v39, %v2825_v50 }
 0x476   : > { %v1010_v47 = vsel %vm369_vm5, %v1009_v42, %v997_v44  ;;  %v1028_v48 = vrot.slane %v1008_v41, 4 }
 0x477   : > { %v1014_v49 = vperm.slane %v1010_v47, %v2825_v50  ;;  %v1041_v51 = vsel %vm369_vm5, %v1025_v46, %v1040_v43  ;;  %v1038_v52 = vrot.slane %v1025_v46, 4 }
 0x478   : > { %v1049_v53 = vperm.slane %v1041_v51, %v2839_v13  ;;  %1196 = vmatpush.bf16.msrb.mxu1 %v2412_v31 }
 0x479   : > { %v1029_v54 = vsel %vm369_vm5, %v1014_v49, %v1028_v48  ;;  %v1026_v55 = vrot.slane %v1014_v49, 4  ;;  %v1039_v56 = vsel %vm369_vm5, %v1038_v52, %v1019_v34  ;;  %v2411_v48 = vld [vmem:[%s3389_s4] sm:$0xff] }
 0x47a   : > { %v1037_v57 = vperm.slane %v1029_v54, %v2839_v13  ;;  %v1054_v58 = vrot.slane %v1049_v53, 4  ;;  %v1045_v59 = vperm.slane %v1039_v56, %v2839_v13 }
 0x47b   : > { %v1027_v60 = vsel %vm369_vm5, %v1026_v55, %v1008_v41 }
 0x47c   : > { %v1055_v61 = vsel %vm369_vm5, %v1054_v58, %v1037_v57  ;;  %v1056_v27 = vrot.slane %v1037_v57, 4  ;;  %v1033_v62 = vperm.slane %v1027_v60, %v2839_v13  ;;  %v1050_v63 = vrot.slane %v1045_v59, 4  ;;  %1197 = vmatpush.bf16.msrb.mxu1 %v2411_v48 }
 0x47d   : > { %1063 = vrot.lane.b32.xlu1 %v1055_v61, %s3394_s13 }
 0x47e   : > { %v1057_v1 = vsel %vm369_vm5, %v1049_v53, %v1056_v27  ;;  %v1052_v2 = vrot.slane %v1033_v62, 4  ;;  %v1051_v40 = vsel %vm369_vm5, %v1050_v63, %v1033_v62  ;;  %v2416_v62 = vld [vmem:[%s3386_s1 + $0x18] sm:$0xff]  ;;  %v2415_v63 = vld [vmem:[%s3386_s1 + $0x10] sm:$0xff] }
 0x47f   : > { %1067 = vrot.lane.b32.xlu2 %v1057_v1, %s3396_s15  ;;  %1276 = vmatpush.bf16.msra.mxu2 %v2416_v62  ;;  %s2186_s15 = scalar_lea.hbm %s3390_s5, %s2402_s10 }
 0x480   : > { %v1053_v3 = vsel %vm369_vm5, %v1045_v59, %v1052_v2 }
 0x481   : > { %1059 = vrot.lane.b32.xlu0 %v1053_v3, %s3395_s16  ;;  %s3411_s16 = sshll.u32 %s2777_s7, 3 }
 0x482   : > { %s241_s14 = scalar_lea.vmem [#allocation5], %s3411_s16 }
 0x483   : > { %1277 = vmatpush.bf16.msra.mxu2 %v2415_v63  ;;  %s2188_s13 = sshll.u32 %s241_s14, 4  ;;  %s2189_s13 = int_to_ptr.vmem [resolvable:$true] %s2188_s13 }
 0x4d9   : > { %v1068_v45 = vpop.permute.xlu2 %1067 }
 0x4ef   : > { %v1064_v6 = vpop.permute.xlu1 %1063 }
 0x4f3   : > { %v1060_v33 = vpop.permute.xlu0 %1059 }
 0x4f4   : > { %v1070_v7 = vsel %vm703_vm6, %v1051_v40, %v1060_v33 }
 0x4f5   : > { %v1072_v9 = vsel %vm1071_vm7, %v1070_v7, %v1064_v6 }
 0x4f6   : > { %v1074_v10 = vsel %vm1073_vm8, %v1072_v9, %v1068_v45 }
 0x4f7   : > { %v1075_v11 = vpack.c.bf16 %v1074_v10, %v1074_v10 }
 0x4f9   : > { %2298 = vmatmul.msk.bf16.vlgmr.msrb.gmra.mxu3 %vm264_vm0, %v1075_v11 }
 0x57c   : > { %v1100_v12 = vpop.f32.mrf.mxu3 }
 0x57d   : > { %v1104_v14 = vadd.f32 %v1100_v12, %v2787_v0  ;;  %v2409_v0 = vld [vmem:[%s3388_s3] sm:$0xff] }
 0x57e   : > { %1154 = vmatpush.bf16.msrb.mxu0 %v2409_v0 }
 0x57f   : > { %v1105_v15 = vsel %vm264_vm0, %v1104_v14, 0.0 }
 0x580   : > { %1106 = vadd.xlane.f32.xlu0 %v1105_v15 }
 0x584   : > { %v1102_v16 = vpop.f32.mrf.mxu3 }
 0x5f3   : > { %v1107_v17 = vpop.xlane.xlu0 %1106 }
 0x5f4   : > { %v1108_v18 = vmul.f32 %v1107_v17, %v2791_v8 }
 0x5f6   : > { %v1109_v19 = vsub.f32 %v1104_v14, %v1108_v18 }
 0x5f8   : > { %v1110_v20 = vmul.f32 %v1109_v19, %v1109_v19  ;;  %v1127_v43 = vmul.f32 1e-05, %v1109_v19 }
 0x5fa   : > { %v1111_v21 = vsel %vm264_vm0, %v1110_v20, 0.0 }
 0x5fb   : > { %1112 = vadd.xlane.f32.xlu1 %v1111_v21 }
 0x66e   : > { %v1113_v24 = vpop.xlane.xlu1 %1112 }
 0x66f   : > { %v1114_v25 = vmul.f32 %v1113_v24, %v2802_v22 }
 0x671   : > { %2513 = vrsqrt.f32 %v1114_v25  ;;  %vm1122_vm9 = vcmp.eq.f32.partialorder %v1114_v25, inf  ;;  %v1125_v38 = vand.u32 2147483648, %v1114_v25  ;;  %vm1124_vm10 = vcmp.eq.f32.partialorder %v1114_v25, 0.0 }
 0x677   : > { %v2514_v29 = vpop.eup %2513 }
 0x678   : > { %v1116_v30 = vmul.f32 %v2514_v29, %v1114_v25 }
 0x67a   : > { %v1117_v32 = vmul.f32 %v2514_v29, %v1116_v30 }
 0x67c   : > { %v1118_v34 = vmul.f32 0.5, %v1117_v32 }
 0x67e   : > { %v1119_v35 = vsub.f32 1.5, %v1118_v34 }
 0x680   : > { %v1120_v36 = vmul.f32 %v2514_v29, %v1119_v35 }
 0x682   : > { %v1121_v37 = vmul.f32 %v1120_v36, %v1114_v25 }
 0x684   : > { %v1123_v39 = vsel %vm1122_vm9, %v1114_v25, %v1121_v37 }
 0x685   : > { %v1126_v41 = vsel %vm1124_vm10, %v1125_v38, %v1123_v39 }
 0x686   : > { %v1128_v42 = vadd.f32 1e-05, %v1126_v41 }
 0x688   : > { %2515 = vrcp.f32 %v1128_v42 }
 0x68e   : > { %v2516_v44 = vpop.eup %2515 }
 0x68f   : > { %v1130_v46 = vmul.f32 %v2516_v44, %v1127_v43 }
 0x691   : > { %v1131_v47 = vpack.c.bf16 %v1130_v46, %v1130_v46 }
 0x693   : > { %2307 = vmatmul.msk.bf16.vlgmr.msrb.gmra.mxu0 %vm264_vm0, %v1131_v47 }
 0x710   : > { %v1156_v49 = vpop.f32.mrf.mxu0 }
 0x711   : > { %v1160_v51 = vmax.f32 %v1156_v49, 0.0 }
 0x713   : > { %v1161_v52 = vpack.c.bf16 %v1160_v51, %v1160_v51 }
 0x715   : > { %2324 = vmatmul.msk.bf16.vlgmr.msrb.gmra.mxu1 %vm1186_vm11, %v1161_v52 }
 0x718   : > { %v1158_v53 = vpop.f32.mrf.mxu0 }
 0x792   : > { %v1199_v54 = vpop.f32.mrf.mxu1 }
 0x793   : > { %v3070_v55 = vadd.f32 %v1199_v54, %v1104_v14 }
 0x795   : > { %v1228_v56 = vsel %vm264_vm0, %v3070_v55, 0.0 }
 0x796   : > { %1229 = vadd.xlane.f32.xlu2 %v1228_v56 }
 0x79a   : > { %v1201_v57 = vpop.f32.mrf.mxu1 }
 0x809   : > { %v1230_v58 = vpop.xlane.xlu2 %1229 }
 0x80a   : > { %v1231_v59 = vmul.f32 %v1230_v58, %v2791_v8 }
 0x80c   : > { %v1232_v60 = vsub.f32 %v3070_v55, %v1231_v59 }
 0x80e   : > { %v1233_v61 = vmul.f32 %v1232_v60, %v1232_v60  ;;  %v1250_v12 = vmul.f32 1e-05, %v1232_v60 }
 0x810   : > { %v1234_v27 = vsel %vm264_vm0, %v1233_v61, 0.0 }
 0x811   : > { %1235 = vadd.xlane.f32.xlu0 %v1234_v27 }
 0x884   : > { %v1236_v1 = vpop.xlane.xlu0 %1235 }
 0x885   : > { %v1237_v2 = vmul.f32 %v1236_v1, %v2802_v22 }
 0x887   : > { %2517 = vrsqrt.f32 %v1237_v2  ;;  %vm1245_vm12 = vcmp.eq.f32.partialorder %v1237_v2, inf  ;;  %v1248_v45 = vand.u32 2147483648, %v1237_v2  ;;  %vm1247_vm13 = vcmp.eq.f32.partialorder %v1237_v2, 0.0 }
 0x88d   : > { %v2518_v40 = vpop.eup %2517 }
 0x88e   : > { %v1239_v3 = vmul.f32 %v2518_v40, %v1237_v2 }
 0x890   : > { %v1240_v4 = vmul.f32 %v2518_v40, %v1239_v3 }
 0x892   : > { %v1241_v5 = vmul.f32 0.5, %v1240_v4 }
 0x894   : > { %v1242_v33 = vsub.f32 1.5, %v1241_v5 }
 0x896   : > { %v1243_v6 = vmul.f32 %v2518_v40, %v1242_v33 }
 0x898   : > { %v1244_v7 = vmul.f32 %v1243_v6, %v1237_v2 }
 0x89a   : > { %v1246_v9 = vsel %vm1245_vm12, %v1237_v2, %v1244_v7 }
 0x89b   : > { %v1249_v10 = vsel %vm1247_vm13, %v1248_v45, %v1246_v9 }
 0x89c   : > { %v1251_v11 = vadd.f32 1e-05, %v1249_v10 }
 0x89e   : > { %2519 = vrcp.f32 %v1251_v11 }
 0x8a4   : > { %v2520_v14 = vpop.eup %2519 }
 0x8a5   : > { %v1253_v15 = vmul.f32 %v2520_v14, %v1250_v12 }
 0x8a7   : > { %v1254_v16 = vpack.c.bf16 %v1253_v15, %v1253_v15 }
 0x8a9   : > { %2353 = vmatmul.msk.bf16.vlgmr.msra.gmra.mxu2 %vm264_vm0, %v1254_v16 }
 0x92c   : > { %v3085_v17 = vpop.f32.mrf.mxu2 }
 0x92d   : > { %1296 = vrot.lane.b32.xlu2 %v3085_v17, %s2645_s17  ;;  %1290 = vrot.lane.b32.xlu0 %v3085_v17, %s2647_s25  ;;  %v1319_v28 = vrot.slane %v3085_v17, 4  ;;  %s3404_s17 = smov 56   ;;  %s3406_s25 = smov 48  }
 0x92e   : > { %1284 = vrot.lane.b32.xlu1 %v3085_v17, %s2649_s8  ;;  %s3408_s8 = smov 16  }
 0x934   : > { %v1281_v18 = vpop.f32.mrf.mxu2 }
 0x935   : > { %1302 = vrot.lane.b32.xlu2 %v3085_v17, %s2648_s26  ;;  %1287 = vrot.lane.b32.xlu0 %v3085_v17, %s2646_s23  ;;  %s3405_s23 = smov 40   ;;  %s3407_s26 = smov 64  }
 0x936   : > { %1293 = vrot.lane.b32.xlu1 %v3085_v17, %s2650_s28  ;;  %s3409_s28 = smov 24  }
 0x93d   : > { %1299 = vrot.lane.b32.xlu0 %v3085_v17, %s2651_s9  ;;  %s3410_s9 = smov 8  }
 0x987   : > { %v1297_v19 = vpop.permute.xlu2 %1296 }
 0x988   : > { %v1355_v29 = vrot.slane %v1297_v19, 4 }
 0x98f   : > { %v1303_v25 = vpop.permute.xlu2 %1302 }
 0x990   : > { %v1353_v32 = vrot.slane %v1303_v25, 4  ;;  %v1356_v38 = vsel %vm369_vm5, %v1303_v25, %v1355_v29 }
 0x991   : > { %v1364_v48 = vperm.slane %v1356_v38, %v2825_v50 }
 0x992   : > { %v1354_v44 = vsel %vm369_vm5, %v1353_v32, %v1297_v19 }
 0x993   : > { %v1360_v53 = vperm.slane %v1354_v44, %v2825_v50  ;;  %v1401_v61 = vrot.slane %v1364_v48, 4 }
 0x995   : > { %v1389_v3 = vrot.slane %v1360_v53, 4 }
 0x99f   : > { %v1291_v20 = vpop.permute.xlu0 %1290 }
 0x9a0   : > { %v1285_v21 = vpop.permute.xlu1 %1284  ;;  %v1329_v23 = vrot.slane %v1291_v20, 4 }
 0x9a1   : > { %v1331_v0 = vrot.slane %v1285_v21, 4 }
 0x9a2   : > { %v1330_v26 = vsel %vm369_vm5, %v1329_v23, %v1285_v21 }
 0x9a3   : > { %v1332_v24 = vsel %vm369_vm5, %v1291_v20, %v1331_v0  ;;  %v1336_v34 = vperm.slane %v1330_v26, %v2825_v50 }
 0x9a4   : > { %v1340_v30 = vperm.slane %v1332_v24, %v2825_v50 }
 0x9a5   : > { %v1365_v46 = vrot.slane %v1336_v34, 4 }
 0x9a6   : > { %v1377_v41 = vrot.slane %v1340_v30, 4 }
 0x9a7   : > { %v1288_v31 = vpop.permute.xlu0 %1287 }
 0x9a8   : > { %v1317_v35 = vrot.slane %v1288_v31, 4  ;;  %v1320_v36 = vsel %vm369_vm5, %v1288_v31, %v1319_v28  ;;  %v1294_v47 = vpop.permute.xlu1 %1293 }
 0x9a9   : > { %v1328_v37 = vperm.slane %v1320_v36, %v2825_v50  ;;  %v1343_v57 = vrot.slane %v1294_v47, 4 }
 0x9aa   : > { %v1318_v39 = vsel %vm369_vm5, %v1317_v35, %v3085_v17 }
 0x9ab   : > { %v1324_v42 = vperm.slane %v1318_v39, %v2825_v50  ;;  %v1379_v43 = vrot.slane %v1328_v37, 4  ;;  %v1378_v51 = vsel %vm369_vm5, %v1377_v41, %v1328_v37 }
 0x9ac   : > { %v1384_v59 = vperm.slane %v1378_v51, %v2839_v13 }
 0x9ad   : > { %v1367_v49 = vrot.slane %v1324_v42, 4  ;;  %v1366_v52 = vsel %vm369_vm5, %v1365_v46, %v1324_v42  ;;  %v1380_v56 = vsel %vm369_vm5, %v1340_v30, %v1379_v43 }
 0x9ae   : > { %v1372_v27 = vperm.slane %v1366_v52, %v2839_v13  ;;  %v1388_v1 = vperm.slane %v1380_v56, %v2839_v13  ;;  %v1423_v5 = vrot.slane %v1384_v59, 4 }
 0x9af   : > { %v1368_v54 = vsel %vm369_vm5, %v1336_v34, %v1367_v49  ;;  %v1300_v58 = vpop.permute.xlu0 %1299 }
 0x9b0   : > { %v1341_v60 = vrot.slane %v1300_v58, 4  ;;  %v1344_v62 = vsel %vm369_vm5, %v1300_v58, %v1343_v57  ;;  %v1376_v63 = vperm.slane %v1368_v54, %v2839_v13  ;;  %v1415_v7 = vrot.slane %v1372_v27, 4 }
 0x9b1   : > { %v1352_v40 = vperm.slane %v1344_v62, %v2825_v50  ;;  %v1427_v12 = vrot.slane %v1388_v1, 4 }
 0x9b2   : > { %v1342_v2 = vsel %vm369_vm5, %v1341_v60, %v1294_v47  ;;  %v1419_v11 = vrot.slane %v1376_v63, 4 }
 0x9b3   : > { %v1348_v4 = vperm.slane %v1342_v2, %v2825_v50  ;;  %v1402_v33 = vsel %vm369_vm5, %v1401_v61, %v1352_v40  ;;  %v1403_v6 = vrot.slane %v1352_v40, 4 }
 0x9b4   : > { %v1408_v10 = vperm.slane %v1402_v33, %v2839_v13 }
 0x9b5   : > { %v1390_v45 = vsel %vm369_vm5, %v1389_v3, %v1348_v4  ;;  %v1391_v9 = vrot.slane %v1348_v4, 4  ;;  %v1404_v15 = vsel %vm369_vm5, %v1364_v48, %v1403_v6 }
 0x9b6   : > { %v1396_v14 = vperm.slane %v1390_v45, %v2839_v13  ;;  %v1412_v18 = vperm.slane %v1404_v15, %v2839_v13  ;;  %v1421_v19 = vrot.slane %v1408_v10, 4  ;;  %v1424_v20 = vsel %vm369_vm5, %v1408_v10, %v1423_v5 }
 0x9b7   : > { %v1392_v16 = vsel %vm369_vm5, %v1360_v53, %v1391_v9  ;;  %v1523_v24 = vrot.slane %v1424_v20, 4 }
 0x9b8   : > { %v1400_v21 = vperm.slane %v1392_v16, %v2839_v13  ;;  %v1413_v23 = vrot.slane %v1396_v14, 4  ;;  %v1416_v0 = vsel %vm369_vm5, %v1396_v14, %v1415_v7  ;;  %v1422_v25 = vsel %vm369_vm5, %v1421_v19, %v1384_v59 }
 0x9b9   : > { %v1425_v26 = vrot.slane %v1412_v18, 4  ;;  %v1428_v28 = vsel %vm369_vm5, %v1412_v18, %v1427_v12  ;;  %v1499_v29 = vrot.slane %v1416_v0, 4  ;;  %v1511_v34 = vrot.slane %v1422_v25, 4 }
 0x9ba   : > { %v1414_v30 = vsel %vm369_vm5, %v1413_v23, %v1372_v27  ;;  %v1417_v31 = vrot.slane %v1400_v21, 4  ;;  %v1420_v32 = vsel %vm369_vm5, %v1400_v21, %v1419_v11  ;;  %v1521_v38 = vrot.slane %v1428_v28, 4 }
 0x9bb   : > { %v1426_v35 = vsel %vm369_vm5, %v1425_v26, %v1388_v1  ;;  %v1487_v36 = vrot.slane %v1414_v30, 4  ;;  %v1497_v37 = vrot.slane %v1420_v32, 4  ;;  %v1524_v41 = vsel %vm369_vm5, %v1428_v28, %v1523_v24 }
 0x9bc   : > { %v1509_v39 = vrot.slane %v1426_v35, 4  ;;  %v1418_v42 = vsel %vm369_vm5, %v1417_v31, %v1376_v63  ;;  %v1500_v43 = vsel %vm369_vm5, %v1420_v32, %v1499_v29  ;;  %v1522_v44 = vsel %vm369_vm5, %v1521_v38, %v1424_v20 }
 0x9bd   : > { %v1532_v46 = vperm.slane %v1524_v41, %v2825_v50  ;;  %v1485_v47 = vrot.slane %v1418_v42, 4  ;;  %v1488_v48 = vsel %vm369_vm5, %v1418_v42, %v1487_v36  ;;  %v1528_v51 = vperm.slane %v1522_v44, %v2825_v50 }
 0x9be   : > { %v1510_v49 = vsel %vm369_vm5, %v1509_v39, %v1422_v25  ;;  %v1496_v52 = vperm.slane %v1488_v48, %v2825_v50  ;;  %v1508_v53 = vperm.slane %v1500_v43, %v2825_v50  ;;  %v1512_v54 = vsel %vm369_vm5, %v1426_v35, %v1511_v34 }
 0x9bf   : > { %v1569_v56 = vrot.slane %v1532_v46, 4  ;;  %v1486_v57 = vsel %vm369_vm5, %v1485_v47, %v1414_v30  ;;  %v1498_v58 = vsel %vm369_vm5, %v1497_v37, %v1416_v0  ;;  %v1520_v59 = vperm.slane %v1512_v54, %v2825_v50 }
 0x9c0   : > { %v1545_v60 = vrot.slane %v1508_v53, 4  ;;  %v1547_v61 = vrot.slane %v1496_v52, 4  ;;  %v1492_v27 = vperm.slane %v1486_v57, %v2825_v50  ;;  %v1504_v62 = vperm.slane %v1498_v58, %v2825_v50 }
 0x9c1   : > { %v1516_v63 = vperm.slane %v1510_v49, %v2825_v50  ;;  %v1557_v1 = vrot.slane %v1528_v51, 4  ;;  %v1570_v40 = vsel %vm369_vm5, %v1569_v56, %v1520_v59  ;;  %v1571_v4 = vrot.slane %v1520_v59, 4 }
 0x9c2   : > { %v1546_v2 = vsel %vm369_vm5, %v1545_v60, %v1496_v52  ;;  %v1548_v3 = vsel %vm369_vm5, %v1508_v53, %v1547_v61  ;;  %v1576_v33 = vperm.slane %v1570_v40, %v2839_v13  ;;  %v1533_v7 = vrot.slane %v1504_v62, 4 }
 0x9c3   : > { %v1552_v5 = vperm.slane %v1546_v2, %v2839_v13  ;;  %v1556_v6 = vperm.slane %v1548_v3, %v2839_v13  ;;  %v1572_v45 = vsel %vm369_vm5, %v1532_v46, %v1571_v4  ;;  %v1558_v9 = vsel %vm369_vm5, %v1557_v1, %v1516_v63 }
 0x9c4   : > { %v1535_v10 = vrot.slane %v1492_v27, 4  ;;  %v1559_v11 = vrot.slane %v1516_v63, 4  ;;  %v1589_v12 = vrot.slane %v1576_v33, 4  ;;  %v1580_v15 = vperm.slane %v1572_v45, %v2839_v13 }
 0x9c5   : > { %v1591_v14 = vrot.slane %v1552_v5, 4  ;;  %v1534_v16 = vsel %vm369_vm5, %v1533_v7, %v1492_v27  ;;  %v1564_v19 = vperm.slane %v1558_v9, %v2839_v13  ;;  %v1595_v20 = vrot.slane %v1556_v6, 4 }
 0x9c6   : > { %v1540_v18 = vperm.slane %v1534_v16, %v2839_v13  ;;  %v1536_v21 = vsel %vm369_vm5, %v1504_v62, %v1535_v10  ;;  %v1590_v23 = vsel %vm369_vm5, %v1589_v12, %v1552_v5  ;;  %v1593_v24 = vrot.slane %v1580_v15, 4 }
 0x9c7   : > { %v1592_v0 = vsel %vm369_vm5, %v1576_v33, %v1591_v14  ;;  %2354 = vmatpush.xpose.msk.msra.mxu3 %vm703_vm6, %v1590_v23  ;;  %v1581_v25 = vrot.slane %v1564_v19, 4  ;;  %v1596_v26 = vsel %vm369_vm5, %v1580_v15, %v1595_v20  ;;  %v1560_v29 = vsel %vm369_vm5, %v1528_v51, %v1559_v11 }
 0x9c8   : > { %2356 = vmatpush.xpose.msk.msra.mxu0 %vm703_vm6, %v1592_v0  ;;  %v1583_v28 = vrot.slane %v1540_v18, 4  ;;  %v1594_v30 = vsel %vm369_vm5, %v1593_v24, %v1556_v6  ;;  %v1544_v31 = vperm.slane %v1536_v21, %v2839_v13  ;;  %v1568_v32 = vperm.slane %v1560_v29, %v2839_v13 }
 0x9c9   : > { %2358 = vmatpush.xpose.msk.msrb.mxu2 %vm703_vm6, %v1594_v30  ;;  %v1582_v34 = vsel %vm369_vm5, %v1581_v25, %v1540_v18 }
 0x9ca   : > { %v1584_v35 = vsel %vm369_vm5, %v1564_v19, %v1583_v28  ;;  %2355 = vmatmul.msk.f32.vlgmr.msra.gmra.mxu3 %vm703_vm6, %v1582_v34  ;;  %v1585_v36 = vrot.slane %v1568_v32, 4  ;;  %v1587_v38 = vrot.slane %v1544_v31, 4 }
 0x9cb   : > { %2360 = vmatpush.xpose.msk.msrb.mxu3 %vm703_vm6, %v1596_v26  ;;  %2357 = vmatmul.msk.f32.vlgmr.msra.gmra.mxu0 %vm703_vm6, %v1584_v35 }
 0x9cc   : > { %v1586_v37 = vsel %vm369_vm5, %v1585_v36, %v1544_v31  ;;  %v1588_v39 = vsel %vm369_vm5, %v1568_v32, %v1587_v38 }
 0x9cd   : > { %2359 = vmatmul.msk.f32.vlgmr.msrb.gmra.mxu2 %vm703_vm6, %v1586_v37 }
 0x9d2   : > { %2361 = vmatmul.msk.f32.vlgmr.msrb.gmra.mxu3 %vm703_vm6, %v1588_v39 }
 0xa48   : > { %v1700_v41 = vpop.f32.mrf.mxu0 }
 0xa49   : > { %v1756_v42 = vmul.f32 0.35355338, %v1700_v41 }
 0xa4b   : > { %v1762_v43 = vsel %vm703_vm6, %v1756_v42, -inf }
 0xa4c   : > { %1763 = vmax.xlane.f32.xlu1 %v1762_v43 }
 0xa4d   : > { %v1674_v44 = vpop.f32.mrf.mxu3 }
 0xa4e   : > { %v1755_v46 = vmul.f32 0.35355338, %v1674_v44 }
 0xa50   : > { %v1726_v47 = vpop.f32.mrf.mxu2  ;;  %v1759_v48 = vsel %vm703_vm6, %v1755_v46, -inf }
 0xa51   : > { %v1757_v49 = vmul.f32 0.35355338, %v1726_v47  ;;  %1760 = vmax.xlane.f32.xlu0 %v1759_v48 }
 0xa53   : > { %v1765_v51 = vsel %vm703_vm6, %v1757_v49, -inf }
 0xa54   : > { %1766 = vmax.xlane.f32.xlu1 %v1765_v51 }
 0xa55   : > { %v1752_v52 = vpop.f32.mrf.mxu3 }
 0xa56   : > { %v1758_v53 = vmul.f32 0.35355338, %v1752_v52 }
 0xa58   : > { %v1768_v54 = vsel %vm703_vm6, %v1758_v53, -inf }
 0xa59   : > { %1769 = vmax.xlane.f32.xlu2 %v1768_v54 }
 0xa65   : > { %1308 = vrot.lane.b32.xlu0 %v3085_v17, %s3404_s17  ;;  %s2190_s17 = sshll.u32 %s2186_s15, 4  ;;  %s2191_s17 = int_to_ptr.hbm [resolvable:$true] %s2190_s17 }
 0xa6d   : > { %1314 = vrot.lane.b32.xlu0 %v3085_v17, %s3405_s23  ;;  %1311 = vrot.lane.b32.xlu1 %v3085_v17, %s3406_s25  ;;  %s2176_s23 = scalar_lea.sflag [#allocation4], %s2777_s7  ;;  %s2589_s25 = sshra.s32 %s2191_s17, 4  ;;  %s2590_s25 = int_to_ptr.hbm [resolvable:$true] %s2589_s25 }
 0xa6e   : > { %s2591_s22 = scalar_lea.hbm %s2590_s25, 8  ;;  %p2596_p0 = scmp.lt.s32.totalorder %s2590_s25, %s3390_s5 }
 0xa6f   : > { %p2592_p6 = scmp.ne.s32.totalorder %s2590_s25, %s2591_s22 }
 0xa71   : > { %1305 = vrot.lane.b32.xlu2 %v3085_v17, %s3407_s26  ;;  %p2593_p9 = pnand %p2592_p6, %p2741_p11 }
 0xa73   : > { %p2594_p13 = pneg %p2593_p9 }
 0xabf   : > { %v1764_v56 = vpop.xlane.xlu1 %1763 }
 0xac0   : > { %v1772_v27 = vsub.f32 %v1756_v42, %v1764_v56 }
 0xac2   : > { %v1777_v2 = vmul.f32 1.442695, %v1772_v27 }
 0xac4   : > { %v1761_v57 = vpop.xlane.xlu0 %1760 }
 0xac5   : > { %v1771_v58 = vsub.f32 %v1755_v46, %v1761_v57 }
 0xac7   : > { %v1775_v59 = vmul.f32 1.442695, %v1771_v58  ;;  %v1767_v60 = vpop.xlane.xlu1 %1766 }
 0xac8   : > { %v1773_v61 = vsub.f32 %v1757_v49, %v1767_v60 }
 0xac9   : > { %2521 = vpow2.f32 %v1775_v59 }
 0xaca   : > { %v1779_v62 = vmul.f32 1.442695, %v1773_v61 }
 0xacc   : > { %2523 = vpow2.f32 %v1779_v62  ;;  %v1770_v63 = vpop.xlane.xlu2 %1769 }
 0xacd   : > { %v1774_v1 = vsub.f32 %v1758_v53, %v1770_v63 }
 0xacf   : > { %v3203_v40 = vpop.eup %2521  ;;  %v1781_v3 = vmul.f32 1.442695, %v1774_v1 }
 0xad0   : > { %v1783_v4 = vsel %vm703_vm6, %v3203_v40, 0.0 }
 0xad1   : > { %2525 = vpow2.f32 %v1781_v3  ;;  %1784 = vadd.xlane.f32.xlu1 %v1783_v4 }
 0xad2   : > { %v3207_v17 = vpop.eup %2523  ;;  %2527 = vpow2.f32 %v1777_v2 }
 0xad3   : > { %v1789_v5 = vsel %vm703_vm6, %v3207_v17, 0.0 }
 0xad4   : > { %1790 = vadd.xlane.f32.xlu2 %v1789_v5  ;;  %v1306_v9 = vpop.permute.xlu2 %1305 }
 0xad5   : > { %v1431_v11 = vrot.slane %v1306_v9, 4 }
 0xad7   : > { %v3211_v33 = vpop.eup %2525  ;;  %v1309_v6 = vpop.permute.xlu0 %1308 }
 0xad8   : > { %v3213_v7 = vpop.eup %2527  ;;  %v1792_v45 = vsel %vm703_vm6, %v3211_v33, 0.0  ;;  %v1443_v12 = vrot.slane %v1309_v6, 4 }
 0xad9   : > { %1793 = vadd.xlane.f32.xlu0 %v1792_v45  ;;  %v1786_v10 = vsel %vm703_vm6, %v3213_v7, 0.0 }
 0xadc   : > { %1787 = vadd.xlane.f32.xlu2 %v1786_v10 }
 0xadf   : > { %v1315_v14 = vpop.permute.xlu0 %1314  ;;  %v1312_v15 = vpop.permute.xlu1 %1311 }
 0xae0   : > { %v1441_v16 = vrot.slane %v1315_v14, 4  ;;  %v1444_v18 = vsel %vm369_vm5, %v1315_v14, %v1443_v12  ;;  %v1429_v19 = vrot.slane %v1312_v15, 4  ;;  %v1432_v20 = vsel %vm369_vm5, %v1312_v15, %v1431_v11 }
 0xae1   : > { %v1452_v21 = vperm.slane %v1444_v18, %v2825_v50  ;;  %v1440_v23 = vperm.slane %v1432_v20, %v2825_v50 }
 0xae2   : > { %v1442_v0 = vsel %vm369_vm5, %v1441_v16, %v1309_v6  ;;  %v1430_v24 = vsel %vm369_vm5, %v1429_v19, %v1306_v9 }
 0xae3   : > { %v1448_v25 = vperm.slane %v1442_v0, %v2825_v50  ;;  %v1465_v26 = vrot.slane %v1452_v21, 4  ;;  %v1436_v28 = vperm.slane %v1430_v24, %v2825_v50  ;;  %v1467_v29 = vrot.slane %v1440_v23, 4 }
 0xae5   : > { %v1453_v30 = vrot.slane %v1448_v25, 4  ;;  %v1455_v31 = vrot.slane %v1436_v28, 4  ;;  %v1466_v32 = vsel %vm369_vm5, %v1465_v26, %v1440_v23  ;;  %v1468_v34 = vsel %vm369_vm5, %v1452_v21, %v1467_v29 }
 0xae6   : > { %v1472_v35 = vperm.slane %v1466_v32, %v2839_v13  ;;  %v1476_v36 = vperm.slane %v1468_v34, %v2839_v13 }
 0xae7   : > { %v1454_v37 = vsel %vm369_vm5, %v1453_v30, %v1436_v28  ;;  %v1456_v38 = vsel %vm369_vm5, %v1448_v25, %v1455_v31 }
 0xae8   : > { %v1460_v39 = vperm.slane %v1454_v37, %v2839_v13  ;;  %v1464_v41 = vperm.slane %v1456_v38, %v2839_v13  ;;  %v1481_v42 = vrot.slane %v1472_v35, 4  ;;  %v1483_v43 = vrot.slane %v1476_v36, 4 }
 0xaea   : > { %v1477_v44 = vrot.slane %v1460_v39, 4  ;;  %v1479_v46 = vrot.slane %v1464_v41, 4  ;;  %v1484_v47 = vsel %vm369_vm5, 0.0, %v1483_v43  ;;  %v1608_v48 = vsel %vm369_vm5, %v1483_v43, %v1472_v35 }
 0xaeb   : > { %v1613_v49 = vrot.slane %v1484_v47, 4  ;;  %v1482_v52 = vsel %vm369_vm5, 0.0, %v1481_v42  ;;  %v1612_v53 = vperm.slane %v1608_v48, %v2825_v50 }
 0xaec   : > { %v1480_v51 = vsel %vm369_vm5, 0.0, %v1479_v46  ;;  %v1597_v54 = vsel %vm369_vm5, %v1479_v46, %v1460_v39  ;;  %v1478_v59 = vsel %vm369_vm5, 0.0, %v1477_v44 }
 0xaed   : > { %v1602_v56 = vrot.slane %v1480_v51, 4  ;;  %v1614_v57 = vsel %vm369_vm5, %v1613_v49, %v1482_v52  ;;  %v1601_v58 = vperm.slane %v1597_v54, %v2825_v50  ;;  %v1633_v61 = vrot.slane %v1612_v53, 4 }
 0xaee   : > { %v1618_v60 = vperm.slane %v1614_v57, %v2825_v50 }
 0xaef   : > { %v1603_v27 = vsel %vm369_vm5, %v1602_v56, %v1478_v59  ;;  %v1621_v62 = vrot.slane %v1601_v58, 4 }
 0xaf0   : > { %v1607_v63 = vperm.slane %v1603_v27, %v2825_v50  ;;  %v1634_v1 = vsel %vm369_vm5, %v1618_v60, %v1633_v61  ;;  %v1631_v2 = vrot.slane %v1618_v60, 4 }
 0xaf1   : > { %v1642_v3 = vperm.slane %v1634_v1, %v2839_v13 }
 0xaf2   : > { %v1622_v4 = vsel %vm369_vm5, %v1607_v63, %v1621_v62  ;;  %v1619_v5 = vrot.slane %v1607_v63, 4  ;;  %v1632_v6 = vsel %vm369_vm5, %v1631_v2, %v1612_v53 }
 0xaf3   : > { %v1630_v45 = vperm.slane %v1622_v4, %v2839_v13  ;;  %v1647_v9 = vrot.slane %v1642_v3, 4  ;;  %v1638_v10 = vperm.slane %v1632_v6, %v2839_v13 }
 0xaf4   : > { %v1620_v11 = vsel %vm369_vm5, %v1619_v5, %v1601_v58 }
 0xaf5   : > { %v1648_v12 = vsel %vm369_vm5, %v1647_v9, %v1630_v45  ;;  %v1626_v14 = vperm.slane %v1620_v11, %v2839_v13  ;;  %v1643_v15 = vrot.slane %v1638_v10, 4  ;;  %v1649_v16 = vrot.slane %v1630_v45, 4 }
 0xaf6   : > { %1867 = vmatpush.msra.mxu2 %v1648_v12 }
 0xaf7   : > { %v1644_v18 = vsel %vm369_vm5, %v1643_v15, %v1626_v14  ;;  %v1650_v19 = vsel %vm369_vm5, %v1642_v3, %v1649_v16  ;;  %v1645_v20 = vrot.slane %v1626_v14, 4 }
 0xaf8   : > { %1821 = vmatpush.msrb.mxu0 %v1644_v18  ;;  %1890 = vmatpush.msra.mxu3 %v1650_v19 }
 0xaf9   : > { %v1646_v21 = vsel %vm369_vm5, %v1638_v10, %v1645_v20 }
 0xafa   : > { %1844 = vmatpush.msra.mxu1 %v1646_v21 }
 0xb44   : > { %v1785_v23 = vpop.xlane.xlu1 %1784 }
 0xb45   : > { %2529 = vrcp.f32 %v1785_v23 }
 0xb47   : > { %v1791_v0 = vpop.xlane.xlu2 %1790 }
 0xb48   : > { %2531 = vrcp.f32 %v1791_v0 }
 0xb4b   : > { %v2530_v24 = vpop.eup %2529 }
 0xb4c   : > { %v1799_v25 = vmul.f32 %v2530_v24, %v3203_v40  ;;  %v1794_v26 = vpop.xlane.xlu0 %1793 }
 0xb4d   : > { %2533 = vrcp.f32 %v1794_v26 }
 0xb4e   : > { %v2532_v28 = vpop.eup %2531  ;;  %2362 = vmatmul.msk.f32.vlgmr.msrb.gmra.mxu0 %vm703_vm6, %v1799_v25 }
 0xb4f   : > { %v1801_v29 = vmul.f32 %v2532_v28, %v3207_v17  ;;  %v1788_v30 = vpop.xlane.xlu2 %1787 }
 0xb50   : > { %2535 = vrcp.f32 %v1788_v30 }
 0xb51   : > { %2364 = vmatmul.msk.f32.vlgmr.msra.gmra.mxu2 %vm703_vm6, %v1801_v29 }
 0xb53   : > { %v2534_v31 = vpop.eup %2533 }
 0xb54   : > { %v1802_v32 = vmul.f32 %v2534_v31, %v3211_v33 }
 0xb56   : > { %v2536_v34 = vpop.eup %2535  ;;  %2365 = vmatmul.msk.f32.vlgmr.msra.gmra.mxu3 %vm703_vm6, %v1802_v32 }
 0xb57   : > { %v1800_v35 = vmul.f32 %v2536_v34, %v3213_v7 }
 0xb59   : > { %2363 = vmatmul.msk.f32.vlgmr.msra.gmra.mxu1 %vm703_vm6, %v1800_v35 }
 0xbcb   : > { %v1823_v40 = vpop.f32.mrf.mxu0 }
 0xbcc   : > { %v1897_v36 = vrot.slane %v1823_v40, 4 }
 0xbd4   : > { %v1869_v37 = vpop.f32.mrf.mxu2 }
 0xbd5   : > { %v1895_v38 = vrot.slane %v1869_v37, 4  ;;  %v1898_v17 = vsel %vm369_vm5, %v1869_v37, %v1897_v36 }
 0xbd6   : > { %v1846_v39 = vpop.f32.mrf.mxu1  ;;  %v1906_v42 = vperm.slane %v1898_v17, %v2825_v50 }
 0xbd7   : > { %v1896_v41 = vsel %vm369_vm5, %v1895_v38, %v1823_v40  ;;  %v1909_v43 = vrot.slane %v1846_v39, 4 }
 0xbd8   : > { %v1902_v33 = vperm.slane %v1896_v41, %v2825_v50  ;;  %v1933_v47 = vrot.slane %v1906_v42, 4  ;;  %v2418_v41 = vld [vmem:[%s3387_s2 + $0x18] sm:$0xff] }
 0xbd9   : > { %v1892_v44 = vpop.f32.mrf.mxu3  ;;  %2042 = vmatpush.bf16.msra.mxu0 %v2418_v41 }
 0xbda   : > { %v1907_v46 = vrot.slane %v1892_v44, 4  ;;  %v1910_v7 = vsel %vm369_vm5, %v1892_v44, %v1909_v43  ;;  %v1921_v51 = vrot.slane %v1902_v33, 4 }
 0xbdb   : > { %v1918_v48 = vperm.slane %v1910_v7, %v2825_v50 }
 0xbdc   : > { %v1908_v49 = vsel %vm369_vm5, %v1907_v46, %v1846_v39 }
 0xbdd   : > { %v1914_v52 = vperm.slane %v1908_v49, %v2825_v50  ;;  %v1931_v53 = vrot.slane %v1918_v48, 4  ;;  %v1934_v54 = vsel %vm369_vm5, %v1918_v48, %v1933_v47 }
 0xbde   : > { %v1942_v56 = vperm.slane %v1934_v54, %v2839_v13 }
 0xbdf   : > { %v1919_v57 = vrot.slane %v1914_v52, 4  ;;  %v1922_v58 = vsel %vm369_vm5, %v1914_v52, %v1921_v51  ;;  %v1932_v59 = vsel %vm369_vm5, %v1931_v53, %v1906_v42 }
 0xbe0   : > { %v1930_v60 = vperm.slane %v1922_v58, %v2839_v13  ;;  %v1938_v61 = vperm.slane %v1932_v59, %v2839_v13  ;;  %v1949_v27 = vrot.slane %v1942_v56, 4  ;;  %v2420_v59 = vld [vmem:[%s3388_s3 + $0x18] sm:$0xff] }
 0xbe1   : > { %v1920_v62 = vsel %vm369_vm5, %v1919_v57, %v1902_v33  ;;  %2098 = vmatpush.bf16.msrb.mxu1 %v2420_v59 }
 0xbe2   : > { %v1926_v63 = vperm.slane %v1920_v62, %v2839_v13  ;;  %v1945_v1 = vrot.slane %v1930_v60, 4  ;;  %v1947_v2 = vrot.slane %v1938_v61, 4  ;;  %v1950_v3 = vsel %vm369_vm5, 0.0, %v1949_v27  ;;  %v2423_v62 = vld [vmem:[%s3389_s4 + $0x30] sm:$0xff] }
 0xbe3   : > { %v1962_v4 = vsel %vm369_vm5, %v1949_v27, %v1938_v61  ;;  %v1967_v5 = vrot.slane %v1950_v3, 4  ;;  %v2424_v27 = vld [vmem:[%s3389_s4 + $0x38] sm:$0xff] }
 0xbe4   : > { %v1943_v6 = vrot.slane %v1926_v63, 4  ;;  %v1946_v45 = vsel %vm369_vm5, 0.0, %v1945_v1  ;;  %v1948_v9 = vsel %vm369_vm5, 0.0, %v1947_v2  ;;  %v1966_v10 = vperm.slane %v1962_v4, %v2825_v50  ;;  %2138 = vmatpush.bf16.msrb.mxu2 %v2424_v27  ;;  %v2422_v2 = vld [vmem:[%s3389_s4 + $0x28] sm:$0xff] }
 0xbe5   : > { %v1956_v11 = vrot.slane %v1946_v45, 4  ;;  %v1951_v12 = vsel %vm369_vm5, %v1945_v1, %v1926_v63  ;;  %v1968_v14 = vsel %vm369_vm5, %v1967_v5, %v1948_v9 }
 0xbe6   : > { %v1944_v15 = vsel %vm369_vm5, 0.0, %v1943_v6  ;;  %v1955_v16 = vperm.slane %v1951_v12, %v2825_v50  ;;  %v1972_v18 = vperm.slane %v1968_v14, %v2825_v50  ;;  %v1987_v19 = vrot.slane %v1966_v10, 4 }
 0xbe7   : > { %v1957_v20 = vsel %vm369_vm5, %v1956_v11, %v1944_v15 }
 0xbe8   : > { %v1961_v21 = vperm.slane %v1957_v20, %v2825_v50  ;;  %v1975_v23 = vrot.slane %v1955_v16, 4  ;;  %v1988_v0 = vsel %vm369_vm5, %v1972_v18, %v1987_v19  ;;  %v1985_v24 = vrot.slane %v1972_v18, 4  ;;  %2139 = vmatpush.bf16.msrb.mxu2 %v2423_v62  ;;  %v2421_v19 = vld [vmem:[%s3389_s4 + $0x20] sm:$0xff] }
 0xbe9   : > { %v1996_v25 = vperm.slane %v1988_v0, %v2839_v13 }
 0xbea   : > { %v1976_v26 = vsel %vm369_vm5, %v1961_v21, %v1975_v23  ;;  %v1973_v28 = vrot.slane %v1961_v21, 4  ;;  %v1986_v29 = vsel %vm369_vm5, %v1985_v24, %v1966_v10 }
 0xbeb   : > { %v1984_v30 = vperm.slane %v1976_v26, %v2839_v13  ;;  %v2001_v31 = vrot.slane %v1996_v25, 4  ;;  %v1992_v32 = vperm.slane %v1986_v29, %v2839_v13 }
 0xbec   : > { %v1974_v34 = vsel %vm369_vm5, %v1973_v28, %v1955_v16  ;;  %2140 = vmatpush.bf16.msrb.mxu2 %v2422_v2 }
 0xbed   : > { %v2002_v50 = vsel %vm369_vm5, %v2001_v31, %v1984_v30  ;;  %v2003_v35 = vrot.slane %v1984_v30, 4  ;;  %v1980_v40 = vperm.slane %v1974_v34, %v2839_v13  ;;  %v1997_v36 = vrot.slane %v1992_v32, 4  ;;  %v2417_v13 = vld [vmem:[%s3387_s2 + $0x10] sm:$0xff] }
 0xbee   : > { %2010 = vrot.lane.b32.xlu0 %v2002_v50, %s3408_s8  ;;  %2043 = vmatpush.bf16.msra.mxu0 %v2417_v13 }
 0xbef   : > { %v2004_v37 = vsel %vm369_vm5, %v1996_v25, %v2003_v35  ;;  %v1999_v38 = vrot.slane %v1980_v40, 4  ;;  %v1998_v17 = vsel %vm369_vm5, %v1997_v36, %v1980_v40 }
 0xbf0   : > { %2014 = vrot.lane.b32.xlu1 %v2004_v37, %s3409_s28  ;;  %2141 = vmatpush.bf16.msrb.mxu2 %v2421_v19  ;;  %s2595_s28 = scalar_lea.hbm %s3390_s5, 16 }
 0xbf1   : > { %v2000_v39 = vsel %vm369_vm5, %v1992_v32, %v1999_v38  ;;  %p2597_p1 = scmp.lt.s32.totalorder %s2595_s28, %s2591_s22 }
 0xbf2   : > { %2006 = vrot.lane.b32.xlu2 %v2000_v39, %s3410_s9 }
 0xbf3   : > { %p2598_p3 = por %p2597_p1, %p2596_p0 }
 0xbf5   : > { %p2599_p4 = pnand %p2598_p3, %p2594_p13 }
 0xc4c   : > { %v2007_v42 = vpop.permute.xlu2 %2006 }
 0xc4d   : > { %v2017_v43 = vsel %vm703_vm6, %v1998_v17, %v2007_v42 }
 0xc60   : > { %v2011_v33 = vpop.permute.xlu0 %2010 }
 0xc61   : > { %v2018_v44 = vsel %vm1071_vm7, %v2017_v43, %v2011_v33 }
 0xc62   : > { %v2015_v46 = vpop.permute.xlu1 %2014 }
 0xc63   : > { %v2019_v7 = vsel %vm1073_vm8, %v2018_v44, %v2015_v46 }
 0xc64   : > { %v2020_v47 = vpack.c.bf16 %v2019_v7, %v2019_v7 }
 0xc66   : > { %2374 = vmatmul.msk.bf16.vlgmr.msra.gmra.mxu0 %vm264_vm0, %v2020_v47 }
 0xce3   : > { %v2045_v48 = vpop.f32.mrf.mxu0 }
 0xce4   : > { %v2049_v49 = vadd.f32 %v2045_v48, %v3070_v55  ;;  %v2419_v55 = vld [vmem:[%s3388_s3 + $0x10] sm:$0xff] }
 0xce5   : > { %2099 = vmatpush.bf16.msrb.mxu1 %v2419_v55 }
 0xce6   : > { %v2050_v51 = vsel %vm264_vm0, %v2049_v49, 0.0 }
 0xce7   : > { %2051 = vadd.xlane.f32.xlu0 %v2050_v51 }
 0xceb   : > { %v2047_v52 = vpop.f32.mrf.mxu0 }
 0xd5a   : > { %v2052_v53 = vpop.xlane.xlu0 %2051 }
 0xd5b   : > { %v2053_v54 = vmul.f32 %v2052_v53, %v2791_v8 }
 0xd5d   : > { %v2054_v56 = vsub.f32 %v2049_v49, %v2053_v54 }
 0xd5f   : > { %v2055_v57 = vmul.f32 %v2054_v56, %v2054_v56  ;;  %v2072_v14 = vmul.f32 1e-05, %v2054_v56 }
 0xd61   : > { %v2056_v58 = vsel %vm264_vm0, %v2055_v57, 0.0 }
 0xd62   : > { %2057 = vadd.xlane.f32.xlu2 %v2056_v58 }
 0xdd5   : > { %v2058_v60 = vpop.xlane.xlu2 %2057 }
 0xdd6   : > { %v2059_v61 = vmul.f32 %v2058_v60, %v2802_v22 }
 0xdd8   : > { %2537 = vrsqrt.f32 %v2059_v61  ;;  %vm2067_vm14 = vcmp.eq.f32.partialorder %v2059_v61, inf  ;;  %v2070_v9 = vand.u32 2147483648, %v2059_v61  ;;  %vm2069_vm15 = vcmp.eq.f32.partialorder %v2059_v61, 0.0 }
 0xdde   : > { %v2538_v63 = vpop.eup %2537 }
 0xddf   : > { %v2061_v1 = vmul.f32 %v2538_v63, %v2059_v61 }
 0xde1   : > { %v2062_v3 = vmul.f32 %v2538_v63, %v2061_v1 }
 0xde3   : > { %v2063_v4 = vmul.f32 0.5, %v2062_v3 }
 0xde5   : > { %v2064_v5 = vsub.f32 1.5, %v2063_v4 }
 0xde7   : > { %v2065_v6 = vmul.f32 %v2538_v63, %v2064_v5 }
 0xde9   : > { %v2066_v45 = vmul.f32 %v2065_v6, %v2059_v61 }
 0xdeb   : > { %v2068_v10 = vsel %vm2067_vm14, %v2059_v61, %v2066_v45 }
 0xdec   : > { %v2071_v11 = vsel %vm2069_vm15, %v2070_v9, %v2068_v10 }
 0xded   : > { %v2073_v12 = vadd.f32 1e-05, %v2071_v11 }
 0xdef   : > { %2539 = vrcp.f32 %v2073_v12 }
 0xdf5   : > { %v2540_v15 = vpop.eup %2539 }
 0xdf6   : > { %v2075_v16 = vmul.f32 %v2540_v15, %v2072_v14 }
 0xdf8   : > { %v2076_v18 = vpack.c.bf16 %v2075_v16, %v2075_v16 }
 0xdfa   : > { %2383 = vmatmul.msk.bf16.vlgmr.msrb.gmra.mxu1 %vm264_vm0, %v2076_v18 }
 0xe77   : > { %v2101_v20 = vpop.f32.mrf.mxu1 }
 0xe78   : > { %v2105_v21 = vmax.f32 %v2101_v20, 0.0 }
 0xe7a   : > { %v2106_v23 = vpack.c.bf16 %v2105_v21, %v2105_v21 }
 0xe7c   : > { %2400 = vmatmul.msk.bf16.vlgmr.msrb.gmra.mxu2 %vm1186_vm11, %v2106_v23 }
 0xe7f   : > { %v2103_v0 = vpop.f32.mrf.mxu1 }
 0xeff   : > { %v2143_v24 = vpop.f32.mrf.mxu2 }
 0xf00   : > { %v2147_v25 = vadd.f32 %v2143_v24, %v2049_v49 }
 0xf02   : > { %v2148_v26 = vsel %vm264_vm0, %v2147_v25, 0.0 }
 0xf03   : > { %2149 = vadd.xlane.f32.xlu1 %v2148_v26 }
 0xf07   : > { %v2145_v28 = vpop.f32.mrf.mxu2 }
 0xf76   : > { %v2150_v29 = vpop.xlane.xlu1 %2149 }
 0xf77   : > { %v2151_v30 = vmul.f32 %v2150_v29, %v2791_v8 }
 0xf79   : > { %v2152_v31 = vsub.f32 %v2147_v25, %v2151_v30 }
 0xf7b   : > { %v2153_v32 = vmul.f32 %v2152_v31, %v2152_v31 }
 0xf7d   : > { %v2154_v34 = vsel %vm264_vm0, %v2153_v32, 0.0 }
 0xf7e   : > { %2155 = vadd.xlane.f32.xlu0 %v2154_v34 }
 0xff1   : > { %v2156_v50 = vpop.xlane.xlu0 %2155 }
 0xff2   : > { %v2157_v35 = vmul.f32 %v2156_v50, %v2802_v22  ;;  %v2170_v22 = vmul.f32 1e-05, %v2152_v31 }
 0xff4   : > { %2541 = vrsqrt.f32 %v2157_v35  ;;  %vm2165_vm1 = vcmp.eq.f32.partialorder %v2157_v35, inf  ;;  %v2168_v8 = vand.u32 2147483648, %v2157_v35  ;;  %vm2167_vm2 = vcmp.eq.f32.partialorder %v2157_v35, 0.0 }
 0xffa   : > { %v2542_v40 = vpop.eup %2541 }
 0xffb   : > { %v2159_v36 = vmul.f32 %v2542_v40, %v2157_v35 }
 0xffd   : > { %v2160_v37 = vmul.f32 %v2542_v40, %v2159_v36 }
 0xfff   : > { %v2161_v38 = vmul.f32 0.5, %v2160_v37 }
0x1001   : > { %v2162_v17 = vsub.f32 1.5, %v2161_v38 }
0x1003   : > { %v2163_v39 = vmul.f32 %v2542_v40, %v2162_v17 }
0x1005   : > { %v2164_v41 = vmul.f32 %v2163_v39, %v2157_v35 }
0x1007   : > { %v2166_v13 = vsel %vm2165_vm1, %v2157_v35, %v2164_v41 }
0x1008   : > { %v2169_v42 = vsel %vm2167_vm2, %v2168_v8, %v2166_v13 }
0x1009   : > { %v2171_v43 = vadd.f32 1e-05, %v2169_v42 }
0x100b   : > { %2543 = vrcp.f32 %v2171_v43 }
0x1011   : > { %v2544_v33 = vpop.eup %2543 }
0x1012   : > { %v2173_v44 = vmul.f32 %v2544_v33, %v2170_v22 }
0x1014   : > { %2174 = vst.msk [vmem:[%s241_s14] sm:$0xff] %vm264_vm0, %v2173_v44 }
0x1015   : > { %2602 = shalt.err (!%p2599_p4)
}
0x1016   : > { %2427 = dma.vmem_to_hbm [thread:$0]  (%p2741_p11), %s2189_s13, 128, %s2191_s17, %s2176_s23  }
0x1017 PF: > { %s2202_s7 = sand.u32 1, %s2629_s18   ;;  %p3412_p7 = scmp.ge.s32.totalorder %s2641_s21, 2 }
0x1018   : > { %s2203_s10 = scalar_lea.sflag [#allocation4], %s2202_s7 }
0x1019   : > { %p2434_p5 = pnand %p3412_p7, %p2745_p12 }
0x101b   : > { %p2435_p8 = pneg %p2434_p5 }
0x101d   : > { %2624 = dma.done.wait (%p2435_p8), %s2203_s10, 128  }
0x101e   : > { %2626 = vsyncadd (%p2435_p8), %s2203_s10, 4294967168  ;;  %p18_p10 = scmp.ge.s32.totalorder %s2716_s24, 4   ;;  %s3413_s18 = smov %s2633_s19 }
0x101f   : > { %s3414_s19 = smov %s2637_s20  ;;  %s3415_s20 = smov %s2728_s27 }
0x1020   : > { %s3416_s21 = smov %s2716_s24  ;;  %20 = sbr.rel (!%p18_p10) target bundleno = 5 (0x5), region = 89 }
0x1025   :  { %2209 = vsyncpa [#allocation3], 1 }
0x1026   :  { %2211 = vsyncpa [#allocation3 + $0x1], 1 }
0x1027   :  { %2212 = vsyncpa [#allocation4], 1 }
0x1028   :  { %2214 = vsyncpa [#allocation4 + $0x1], 1 }

</bundles_post_ra>
